<compile_context>
chip_gen: v5e
topology: v5e:2x2
jax: 0.10.0
libtpu: 0.0.40
codegen_flags: <defaults>
</compile_context>

<pallas_src>
import jax
import jax.numpy as jnp
import numpy as np
from jax import lax
from jax.experimental import pallas as pl
from jax.experimental.pallas import tpu as pltpu

_EPS = 1e-8


def _round_up(x, m):
    return (x + m - 1) // m * m


def _softplus(z):
    # Stable log(1 + exp(z)); the exp argument is always <= 0 (one exp, one log).
    return jnp.maximum(z, 0.0) + jnp.log(1.0 + jnp.exp(-jnp.abs(z)))


def _logaddexp(a, b):
    # max + log(1 + exp(-|a-b|)): one exp / one log instead of two exp + one log.
    return jnp.maximum(a, b) + jnp.log(1.0 + jnp.exp(-jnp.abs(a - b)))


# ---------------------------------------------------------------------------
# T > 1 : chunked log-space scan
# ---------------------------------------------------------------------------
def _minlstm_scan_kernel(x_ref, wgT_ref, pc_ref, o_ref, carry_ref):
    """One (batch-block, seq-chunk) grid step.

    x_ref:     (BB, TT, Dp)  input chunk
    wgT_ref:   (Dp, 3*Hp)    gate weight, transposed + gate-major lane layout
    pc_ref:    (BB, Hp)      initial cell state
    o_ref:     (BB, TT, Hp)  next_cell for this chunk
    carry_ref: (BB, Hp) f32  running cumsum of log f' carried across seq chunks
    """
    BB, TT, Dp = x_ref.shape
    Hp = o_ref.shape[-1]
    t = pl.program_id(1)

    @pl.when(t == 0)
    def _():
        carry_ref[...] = jnp.zeros_like(carry_ref)

    # ---- gate projection: one (BB*TT, Dp) @ (Dp, 3Hp) MXU matmul ----
    x2d = x_ref[...].reshape(BB * TT, Dp)
    prec = lax.Precision.HIGHEST if x2d.dtype == jnp.float32 else None
    g = jnp.dot(x2d, wgT_ref[...], preferred_element_type=jnp.float32,
                precision=prec)
    g = g.reshape(BB, TT, 3 * Hp)
    g_f = g[..., 0:Hp]
    g_i = g[..., Hp:2 * Hp]
    tilde_h = g[..., 2 * Hp:3 * Hp]

    # ---- log-space coefficients via softplus identities ----
    # log sigmoid(z) == -softplus(-z). (This drops the module's +1e-8 inside the
    # gate logs; the difference is <= 1e-8 / sigmoid, i.e. the exact-math limit
    # of the module's own formulation.)
    log_f = -_softplus(-g_f)
    log_i = -_softplus(-g_i)
    d = log_i - log_f
    log_f_prime = _softplus(d)              # = logaddexp(log_f, log_i) - log_f
    log_i_prime = log_f_prime - d           # = logaddexp(log_f, log_i) - log_i

    log_prev_cell = jnp.log(pc_ref[...].astype(jnp.float32) + _EPS)   # (BB, Hp)
    a = log_f_prime + log_prev_cell[:, None, :]
    b = log_i_prime + jnp.log(tilde_h + _EPS)
    log_state = _logaddexp(a, b)                                      # (BB,TT,Hp)

    # ---- in-chunk inclusive cumsum as a lower-triangular MXU matmul ----
    # Mask is built in-register (no HBM tri operand); HIGHEST precision keeps
    # the f32 carry exact for long sequences.
    row = lax.broadcasted_iota(jnp.int32, (TT, TT), 0)
    col = lax.broadcasted_iota(jnp.int32, (TT, TT), 1)
    tri = (row >= col).astype(jnp.float32)

    carry = carry_ref[...]                                            # (BB, Hp)
    for bb in range(BB):  # static unroll; BB is small (<= 8)
        cs = jnp.dot(tri, log_f_prime[bb], preferred_element_type=jnp.float32,
                     precision=lax.Precision.HIGHEST)                 # (TT, Hp)
        log_cell = cs + log_state[bb] + carry[bb:bb + 1, :]
        o_ref[bb] = jnp.exp(log_cell).astype(o_ref.dtype)
        carry_ref[bb:bb + 1, :] = carry[bb:bb + 1, :] + cs[TT - 1:TT, :]


# ---------------------------------------------------------------------------
# T == 1 : decode step (direct convex combination)
# ---------------------------------------------------------------------------
def _minlstm_step_kernel(x_ref, wgT_ref, pc_ref, o_ref):
    Hp = o_ref.shape[-1]
    prec = lax.Precision.HIGHEST if x_ref.dtype == jnp.float32 else None
    g = jnp.dot(x_ref[...], wgT_ref[...], preferred_element_type=jnp.float32,
                precision=prec)
    f_gate = jax.nn.sigmoid(g[:, 0:Hp])
    i_gate = jax.nn.sigmoid(g[:, Hp:2 * Hp])
    tilde_h = g[:, 2 * Hp:3 * Hp]
    inv_s = pl.reciprocal(f_gate + i_gate, approx=True)  # one EUP recip, no divides
    next_cell = (f_gate * inv_s) * pc_ref[...].astype(jnp.float32) \
        + (i_gate * inv_s) * tilde_h
    o_ref[...] = next_cell.astype(o_ref.dtype)


# ---------------------------------------------------------------------------
# Wrapper
# ---------------------------------------------------------------------------
def min_lstm_forward(x, w_gates, prev_cell=None, *, mxu_dtype=None,
                     seq_tile=256, batch_tile=None, interpret=False):
    """MinLSTM forward (expansion_factor == 1.0, to_out == Identity).

    x:         (B, T, D)
    w_gates:   (3*H, D)  -- PyTorch nn.Linear weight layout of to_gates_and_hidden
    prev_cell: (B, H) or None
    mxu_dtype: optional dtype (e.g. jnp.bfloat16) to feed the gate matmul;
               accumulation and all log-space elementwise math stay f32.
    Returns the module output (== next_cell == next_hidden), shape (B, T, H).
    The final recurrent state of the module is simply out[:, -1:].
    """
    assert seq_tile % 8 == 0
    B, T, D = x.shape
    H3, D2 = w_gates.shape
    assert D2 == D and H3 % 3 == 0
    H = H3 // 3
    out_dtype = x.dtype
    if prev_cell is None:
        prev_cell = jnp.zeros((B, H), jnp.float32)

    # ---- lane padding (no-op when H and D are already multiples of 128) ----
    Hp = _round_up(H, 128)
    Dp = _round_up(D, 128)
    w3 = jnp.pad(w_gates.reshape(3, H, D), ((0, 0), (0, Hp - H), (0, Dp - D)))
    wgT = jnp.transpose(w3, (2, 0, 1)).reshape(Dp, 3 * Hp)  # gates at 0, Hp, 2Hp
    pcp = jnp.pad(prev_cell.astype(jnp.float32), ((0, 0), (0, Hp - H)))
    if mxu_dtype is not None:
        wgT = wgT.astype(mxu_dtype)

    if T == 1:
        # Decode path: single block over the (typically modest) decode batch.
        x2 = jnp.pad(x[:, 0, :], ((0, 0), (0, Dp - D)))
        if mxu_dtype is not None:
            x2 = x2.astype(mxu_dtype)
        out = pl.pallas_call(
            _minlstm_step_kernel,
            out_shape=jax.ShapeDtypeStruct((B, Hp), out_dtype),
            grid=(1,),
            in_specs=[pl.BlockSpec((B, Dp), lambda i: (0, 0)),
                      pl.BlockSpec((Dp, 3 * Hp), lambda i: (0, 0)),
                      pl.BlockSpec((B, Hp), lambda i: (0, 0))],
            out_specs=pl.BlockSpec((B, Hp), lambda i: (0, 0)),
            compiler_params=pltpu.CompilerParams(vmem_limit_bytes=32 << 20),
            interpret=interpret,
        )(x2, wgT, pcp)
        return out[:, None, :H]

    # ---- tiling: seq chunks of TT rows, BB sequences per grid step ----
    TT = min(seq_tile, _round_up(T, 8))
    Tp = _round_up(T, TT)
    if batch_tile is None:
        batch_tile = max(1, min(B, 512 // TT, 8))
    BB = max(1, min(batch_tile, B))
    Bp = _round_up(B, BB)

    xp = jnp.pad(x, ((0, Bp - B), (0, Tp - T), (0, Dp - D)))
    if mxu_dtype is not None:
        xp = xp.astype(mxu_dtype)
    pcp = jnp.pad(pcp, ((0, Bp - B), (0, 0)))

    # Explicit VMEM budget (double-buffered blocks + scratch + temporaries),
    # capped at 64 MiB so the same tiling also fits v7x.
    est = 2 * (BB * TT * Dp * xp.dtype.itemsize
               + Dp * 3 * Hp * wgT.dtype.itemsize
               + BB * Hp * 4
               + BB * TT * Hp * jnp.dtype(out_dtype).itemsize)
    est += BB * Hp * 4                           # carry scratch
    est += 10 * BB * TT * Hp * 4 + TT * TT * 4   # live f32 temporaries + tri
    vmem_limit = int(min(64 << 20, max(32 << 20, est + (4 << 20))))

    out = pl.pallas_call(
        _minlstm_scan_kernel,
        out_shape=jax.ShapeDtypeStruct((Bp, Tp, Hp), out_dtype),
        grid_spec=pltpu.PrefetchScalarGridSpec(
            num_scalar_prefetch=0,
            grid=(Bp // BB, Tp // TT),
            in_specs=[
                pl.BlockSpec((BB, TT, Dp), lambda bi, ti: (bi, ti, 0)),
                pl.BlockSpec((Dp, 3 * Hp), lambda bi, ti: (0, 0)),
                pl.BlockSpec((BB, Hp), lambda bi, ti: (bi, 0)),
            ],
            out_specs=pl.BlockSpec((BB, TT, Hp), lambda bi, ti: (bi, ti, 0)),
            scratch_shapes=[pltpu.VMEM((BB, Hp), jnp.float32)],
        ),
        compiler_params=pltpu.CompilerParams(
            dimension_semantics=("parallel", "arbitrary"),
            vmem_limit_bytes=vmem_limit,
        ),
        interpret=interpret,
    )(xp, wgT, pcp)
    return out[:B, :T, :H]


# ---------------------------------------------------------------------------
# Pure-JAX reference (faithful transcription of the PyTorch forward)
# ---------------------------------------------------------------------------
def min_lstm_reference(x, w_gates, prev_cell=None, mxu_dtype=None):
    B, T, D = x.shape
    H = w_gates.shape[0] // 3
    if prev_cell is None:
        prev_cell = jnp.zeros((B, H), jnp.float32)
    xr, wr = x, w_gates
    if mxu_dtype is not None:
        xr, wr = x.astype(mxu_dtype), w_gates.astype(mxu_dtype)
    g = jnp.einsum("btd,hd->bth", xr, wr, preferred_element_type=jnp.float32,
                   precision=lax.Precision.HIGHEST)
    f_gate = jax.nn.sigmoid(g[..., 0:H])
    i_gate = jax.nn.sigmoid(g[..., H:2 * H])
    tilde_h = g[..., 2 * H:]
    if T == 1:
        s = f_gate + i_gate
        return (f_gate / s) * prev_cell[:, None, :] + (i_gate / s) * tilde_h
    log_f = jnp.log(f_gate + _EPS)
    log_i = jnp.log(i_gate + _EPS)
    lse = jnp.logaddexp(log_f, log_i)
    log_f_prime = lse - log_f
    log_i_prime = lse - log_i
    a = log_f_prime + jnp.log(prev_cell.astype(jnp.float32) + _EPS)[:, None, :]
    b = log_i_prime + jnp.log(tilde_h + _EPS)
    log_state = jnp.logaddexp(a, b)
    log_cell = jnp.cumsum(log_f_prime, axis=1) + log_state
    return jnp.exp(log_cell)


if __name__ == "__main__":
    B, T, D = 2, 8, 32
    H = D  # expansion_factor == 1.0

    key = jax.random.PRNGKey(0)
    kx, kw, kc, kx2 = jax.random.split(key, 4)
    # Non-negative inputs/weights keep tilde_h >= 0: the module (and this kernel)
    # takes log(tilde_h + 1e-8), which is NaN for negative candidates in PyTorch too.
    x = jax.random.uniform(kx, (B, T, D), dtype=jnp.float32)
    w_gates = jax.random.uniform(kw, (3 * H, D), dtype=jnp.float32) * 0.1
    prev_cell = jax.random.uniform(kc, (B, H), dtype=jnp.float32)

    # 1) T > 1, exact f32 MXU path.
    out = jax.block_until_ready(min_lstm_forward(x, w_gates, prev_cell))
    ref = min_lstm_reference(x, w_gates, prev_cell)
    assert out.shape == (B, T, H)
    np.testing.assert_allclose(np.asarray(out), np.asarray(ref), rtol=2e-5, atol=2e-5)

    # 2) T > 1, multi-chunk scan exercising the carried cumsum + batch/seq padding.
    B2, T2 = 3, 40
    x2 = jax.random.uniform(kx2, (B2, T2, D), dtype=jnp.float32)
    pc2 = jnp.zeros((B2, H), jnp.float32)
    out2 = jax.block_until_ready(
        min_lstm_forward(x2, w_gates, pc2, seq_tile=16, batch_tile=2))
    ref2 = min_lstm_reference(x2, w_gates, pc2)
    np.testing.assert_allclose(np.asarray(out2), np.asarray(ref2), rtol=5e-4, atol=1e-5)

    # 3) T > 1, bf16-fed MXU fast path (f32 accumulation) vs a bf16-fed reference.
    out_bf = jax.block_until_ready(
        min_lstm_forward(x, w_gates, prev_cell, mxu_dtype=jnp.bfloat16))
    ref_bf = min_lstm_reference(x, w_gates, prev_cell, mxu_dtype=jnp.bfloat16)
    np.testing.assert_allclose(np.asarray(out_bf), np.asarray(ref_bf),
                               rtol=2e-3, atol=2e-3)

    # 4) T == 1 decode path (approx-reciprocal gate normalization).
    out1 = jax.block_until_ready(min_lstm_forward(x[:, :1], w_gates, prev_cell))
    ref1 = min_lstm_reference(x[:, :1], w_gates, prev_cell)
    np.testing.assert_allclose(np.asarray(out1), np.asarray(ref1),
                               rtol=5e-3, atol=5e-3)

    print("KERNEL_OK")
</pallas_src>

<mosaic_0001>
module attributes {stable_mosaic.version = 11 : i64} {
  func.func @_minlstm_scan_kernel(%arg0: i32, %arg1: i32, %arg2: memref<2x8x128xf32, #tpu.memory_space<vmem>>, %arg3: memref<128x384xf32, #tpu.memory_space<vmem>>, %arg4: memref<2x128xf32, #tpu.memory_space<vmem>>, %arg5: memref<2x8x128xf32, #tpu.memory_space<vmem>>, %arg6: memref<2x128xf32, #tpu.memory_space<vmem>>) attributes {dimension_semantics = [#tpu.dimension_semantics<parallel>, #tpu.dimension_semantics<arbitrary>], iteration_bounds = array<i64: 1, 1>, scalar_prefetch = 0 : i64, scratch_operands = 1 : i64, tpu.core_type = #tpu.core_type<tc>, window_params = [{transform_indices = @transform_0, window_bounds = array<i64: 2, 8, 128>}, {pipeline_mode = #tpu.pipeline_mode<synchronous>, transform_indices = @transform_1, window_bounds = array<i64: 128, 384>}, {transform_indices = @transform_2, window_bounds = array<i64: 2, 128>}, {transform_indices = @transform_3, window_bounds = array<i64: 2, 8, 128>}]} {
    %c0_i32 = arith.constant 0 : i32
    %0 = arith.cmpi eq, %arg1, %c0_i32 : i32
    %1 = arith.extui %0 : i1 to i32
    %c0_i32_0 = arith.constant 0 : i32
    %2 = arith.cmpi ne, %1, %c0_i32_0 : i32
    scf.if %2 {
      %cst_37 = arith.constant 0.000000e+00 : f32
      %112 = vector.broadcast %cst_37 : f32 to vector<2x128xf32>
      %c0_38 = arith.constant 0 : index
      %c0_39 = arith.constant 0 : index
      %113 = vector.load %arg6[%c0_38, %c0_39] : memref<2x128xf32, #tpu.memory_space<vmem>>, vector<2x128xf32>
      tpu.vector_store %arg6[%c0_38, %c0_39], %112 {strides = array<i32>} : memref<2x128xf32, #tpu.memory_space<vmem>>, vector<2x128xf32>,
    } else {
    }
    %c0 = arith.constant 0 : index
    %c0_1 = arith.constant 0 : index
    %c0_2 = arith.constant 0 : index
    %3 = vector.load %arg2[%c0, %c0_1, %c0_2] : memref<2x8x128xf32, #tpu.memory_space<vmem>>, vector<2x8x128xf32>
    %4 = vector.shape_cast %3 : vector<2x8x128xf32> to vector<16x128xf32>
    %c0_3 = arith.constant 0 : index
    %c0_4 = arith.constant 0 : index
    %5 = vector.load %arg3[%c0_3, %c0_4] : memref<128x384xf32, #tpu.memory_space<vmem>>, vector<128x384xf32>
    %cst = arith.constant dense<0.000000e+00> : vector<16x384xf32>
    %6 = tpu.matmul %4, %5, %cst {dimension_numbers = #tpu.dot_dimension_numbers<[1], [0], [0], [1], [0, 0, 1, 1], [], []>, precision = #tpu.contract_precision<fp32>} : vector<16x128xf32>, vector<128x384xf32>, vector<16x384xf32> -> vector<16x384xf32>
    %7 = vector.shape_cast %6 : vector<16x384xf32> to vector<2x8x384xf32>
    %8 = vector.extract_strided_slice %7 {offsets = [0, 0, 0], sizes = [2, 8, 128], strides = [1, 1, 1]} : vector<2x8x384xf32> to vector<2x8x128xf32>
    %9 = vector.extract_strided_slice %7 {offsets = [0, 0, 128], sizes = [2, 8, 128], strides = [1, 1, 1]} : vector<2x8x384xf32> to vector<2x8x128xf32>
    %10 = vector.extract_strided_slice %7 {offsets = [0, 0, 256], sizes = [2, 8, 128], strides = [1, 1, 1]} : vector<2x8x384xf32> to vector<2x8x128xf32>
    %cst_5 = arith.constant 0.000000e+00 : f32
    %11 = vector.broadcast %cst_5 : f32 to vector<2x8x128xf32>
    %12 = arith.subf %11, %8 : vector<2x8x128xf32>
    %cst_6 = arith.constant 0.000000e+00 : f32
    %13 = vector.broadcast %cst_6 : f32 to vector<2x8x128xf32>
    %14 = arith.maximumf %12, %13 : vector<2x8x128xf32>
    %15 = math.absf %12 : vector<2x8x128xf32>
    %cst_7 = arith.constant 0.000000e+00 : f32
    %16 = vector.broadcast %cst_7 : f32 to vector<2x8x128xf32>
    %17 = arith.subf %16, %15 : vector<2x8x128xf32>
    %18 = math.exp %17 : vector<2x8x128xf32>
    %cst_8 = arith.constant 1.000000e+00 : f32
    %19 = vector.broadcast %cst_8 : f32 to vector<2x8x128xf32>
    %20 = arith.addf %19, %18 : vector<2x8x128xf32>
    %21 = math.log %20 : vector<2x8x128xf32>
    %22 = arith.addf %14, %21 : vector<2x8x128xf32>
    %cst_9 = arith.constant 0.000000e+00 : f32
    %23 = vector.broadcast %cst_9 : f32 to vector<2x8x128xf32>
    %24 = arith.subf %23, %22 : vector<2x8x128xf32>
    %cst_10 = arith.constant 0.000000e+00 : f32
    %25 = vector.broadcast %cst_10 : f32 to vector<2x8x128xf32>
    %26 = arith.subf %25, %9 : vector<2x8x128xf32>
    %cst_11 = arith.constant 0.000000e+00 : f32
    %27 = vector.broadcast %cst_11 : f32 to vector<2x8x128xf32>
    %28 = arith.maximumf %26, %27 : vector<2x8x128xf32>
    %29 = math.absf %26 : vector<2x8x128xf32>
    %cst_12 = arith.constant 0.000000e+00 : f32
    %30 = vector.broadcast %cst_12 : f32 to vector<2x8x128xf32>
    %31 = arith.subf %30, %29 : vector<2x8x128xf32>
    %32 = math.exp %31 : vector<2x8x128xf32>
    %cst_13 = arith.constant 1.000000e+00 : f32
    %33 = vector.broadcast %cst_13 : f32 to vector<2x8x128xf32>
    %34 = arith.addf %33, %32 : vector<2x8x128xf32>
    %35 = math.log %34 : vector<2x8x128xf32>
    %36 = arith.addf %28, %35 : vector<2x8x128xf32>
    %cst_14 = arith.constant 0.000000e+00 : f32
    %37 = vector.broadcast %cst_14 : f32 to vector<2x8x128xf32>
    %38 = arith.subf %37, %36 : vector<2x8x128xf32>
    %39 = arith.subf %38, %24 : vector<2x8x128xf32>
    %cst_15 = arith.constant 0.000000e+00 : f32
    %40 = vector.broadcast %cst_15 : f32 to vector<2x8x128xf32>
    %41 = arith.maximumf %39, %40 : vector<2x8x128xf32>
    %42 = math.absf %39 : vector<2x8x128xf32>
    %cst_16 = arith.constant 0.000000e+00 : f32
    %43 = vector.broadcast %cst_16 : f32 to vector<2x8x128xf32>
    %44 = arith.subf %43, %42 : vector<2x8x128xf32>
    %45 = math.exp %44 : vector<2x8x128xf32>
    %cst_17 = arith.constant 1.000000e+00 : f32
    %46 = vector.broadcast %cst_17 : f32 to vector<2x8x128xf32>
    %47 = arith.addf %46, %45 : vector<2x8x128xf32>
    %48 = math.log %47 : vector<2x8x128xf32>
    %49 = arith.addf %41, %48 : vector<2x8x128xf32>
    %50 = arith.subf %49, %39 : vector<2x8x128xf32>
    %c0_18 = arith.constant 0 : index
    %c0_19 = arith.constant 0 : index
    %51 = vector.load %arg4[%c0_18, %c0_19] : memref<2x128xf32, #tpu.memory_space<vmem>>, vector<2x128xf32>
    %cst_20 = arith.constant 9.99999993E-9 : f32
    %52 = vector.broadcast %cst_20 : f32 to vector<2x128xf32>
    %53 = arith.addf %51, %52 : vector<2x128xf32>
    %54 = math.log %53 : vector<2x128xf32>
    %55 = vector.shape_cast %54 : vector<2x128xf32> to vector<2x1x128xf32>
    %56 = vector.broadcast %55 : vector<2x1x128xf32> to vector<2x8x128xf32>
    %57 = arith.addf %49, %56 : vector<2x8x128xf32>
    %cst_21 = arith.constant 9.99999993E-9 : f32
    %58 = vector.broadcast %cst_21 : f32 to vector<2x8x128xf32>
    %59 = arith.addf %10, %58 : vector<2x8x128xf32>
    %60 = math.log %59 : vector<2x8x128xf32>
    %61 = arith.addf %50, %60 : vector<2x8x128xf32>
    %62 = arith.maximumf %57, %61 : vector<2x8x128xf32>
    %63 = arith.subf %57, %61 : vector<2x8x128xf32>
    %64 = math.absf %63 : vector<2x8x128xf32>
    %cst_22 = arith.constant 0.000000e+00 : f32
    %65 = vector.broadcast %cst_22 : f32 to vector<2x8x128xf32>
    %66 = arith.subf %65, %64 : vector<2x8x128xf32>
    %67 = math.exp %66 : vector<2x8x128xf32>
    %cst_23 = arith.constant 1.000000e+00 : f32
    %68 = vector.broadcast %cst_23 : f32 to vector<2x8x128xf32>
    %69 = arith.addf %68, %67 : vector<2x8x128xf32>
    %70 = math.log %69 : vector<2x8x128xf32>
    %71 = arith.addf %62, %70 : vector<2x8x128xf32>
    %72 = tpu.iota {dimensions = array<i32: 0>} : vector<8x8xi32>
    %73 = tpu.iota {dimensions = array<i32: 1>} : vector<8x8xi32>
    %74 = arith.cmpi sge, %72, %73 : vector<8x8xi32>
    %75 = arith.extui %74 : vector<8x8xi1> to vector<8x8xi32>
    %76 = arith.sitofp %75 : vector<8x8xi32> to vector<8x8xf32>
    %c0_24 = arith.constant 0 : index
    %c0_25 = arith.constant 0 : index
    %77 = vector.load %arg6[%c0_24, %c0_25] : memref<2x128xf32, #tpu.memory_space<vmem>>, vector<2x128xf32>
    %78 = vector.extract_strided_slice %49 {offsets = [0, 0, 0], sizes = [1, 8, 128], strides = [1, 1, 1]} : vector<2x8x128xf32> to vector<1x8x128xf32>
    %79 = vector.shape_cast %78 : vector<1x8x128xf32> to vector<8x128xf32>
    %cst_26 = arith.constant dense<0.000000e+00> : vector<8x128xf32>
    %80 = tpu.matmul %76, %79, %cst_26 {dimension_numbers = #tpu.dot_dimension_numbers<[1], [0], [0], [1], [0, 0, 1, 1], [], []>, precision = #tpu.contract_precision<fp32>} : vector<8x8xf32>, vector<8x128xf32>, vector<8x128xf32> -> vector<8x128xf32>
    %81 = vector.extract_strided_slice %71 {offsets = [0, 0, 0], sizes = [1, 8, 128], strides = [1, 1, 1]} : vector<2x8x128xf32> to vector<1x8x128xf32>
    %82 = vector.shape_cast %81 : vector<1x8x128xf32> to vector<8x128xf32>
    %83 = arith.addf %80, %82 : vector<8x128xf32>
    %84 = vector.extract_strided_slice %77 {offsets = [0, 0], sizes = [1, 128], strides = [1, 1]} : vector<2x128xf32> to vector<1x128xf32>
    %85 = vector.broadcast %84 : vector<1x128xf32> to vector<8x128xf32>
    %86 = arith.addf %83, %85 : vector<8x128xf32>
    %87 = math.exp %86 : vector<8x128xf32>
    %c0_27 = arith.constant 0 : index
    %c0_28 = arith.constant 0 : index
    %c0_29 = arith.constant 0 : index
    %88 = vector.load %arg5[%c0_27, %c0_28, %c0_29] : memref<2x8x128xf32, #tpu.memory_space<vmem>>, vector<1x8x128xf32>
    %89 = vector.shape_cast %88 : vector<1x8x128xf32> to vector<8x128xf32>
    %90 = vector.shape_cast %87 : vector<8x128xf32> to vector<1x8x128xf32>
    tpu.vector_store %arg5[%c0_27, %c0_28, %c0_29], %90 {strides = array<i32>} : memref<2x8x128xf32, #tpu.memory_space<vmem>>, vector<1x8x128xf32>,
    %91 = vector.extract_strided_slice %77 {offsets = [0, 0], sizes = [1, 128], strides = [1, 1]} : vector<2x128xf32> to vector<1x128xf32>
    %92 = vector.extract_strided_slice %80 {offsets = [7, 0], sizes = [1, 128], strides = [1, 1]} : vector<8x128xf32> to vector<1x128xf32>
    %93 = arith.addf %91, %92 : vector<1x128xf32>
    %c0_30 = arith.constant 0 : index
    %c0_31 = arith.constant 0 : index
    %94 = vector.load %arg6[%c0_30, %c0_31] : memref<2x128xf32, #tpu.memory_space<vmem>>, vector<1x128xf32>
    tpu.vector_store %arg6[%c0_30, %c0_31], %93 {strides = array<i32>} : memref<2x128xf32, #tpu.memory_space<vmem>>, vector<1x128xf32>,
    %95 = vector.extract_strided_slice %49 {offsets = [1, 0, 0], sizes = [1, 8, 128], strides = [1, 1, 1]} : vector<2x8x128xf32> to vector<1x8x128xf32>
    %96 = vector.shape_cast %95 : vector<1x8x128xf32> to vector<8x128xf32>
    %cst_32 = arith.constant dense<0.000000e+00> : vector<8x128xf32>
    %97 = tpu.matmul %76, %96, %cst_32 {dimension_numbers = #tpu.dot_dimension_numbers<[1], [0], [0], [1], [0, 0, 1, 1], [], []>, precision = #tpu.contract_precision<fp32>} : vector<8x8xf32>, vector<8x128xf32>, vector<8x128xf32> -> vector<8x128xf32>
    %98 = vector.extract_strided_slice %71 {offsets = [1, 0, 0], sizes = [1, 8, 128], strides = [1, 1, 1]} : vector<2x8x128xf32> to vector<1x8x128xf32>
    %99 = vector.shape_cast %98 : vector<1x8x128xf32> to vector<8x128xf32>
    %100 = arith.addf %97, %99 : vector<8x128xf32>
    %101 = vector.extract_strided_slice %77 {offsets = [1, 0], sizes = [1, 128], strides = [1, 1]} : vector<2x128xf32> to vector<1x128xf32>
    %102 = vector.broadcast %101 : vector<1x128xf32> to vector<8x128xf32>
    %103 = arith.addf %100, %102 : vector<8x128xf32>
    %104 = math.exp %103 : vector<8x128xf32>
    %c1 = arith.constant 1 : index
    %c0_33 = arith.constant 0 : index
    %c0_34 = arith.constant 0 : index
    %105 = vector.load %arg5[%c1, %c0_33, %c0_34] : memref<2x8x128xf32, #tpu.memory_space<vmem>>, vector<1x8x128xf32>
    %106 = vector.shape_cast %105 : vector<1x8x128xf32> to vector<8x128xf32>
    %107 = vector.shape_cast %104 : vector<8x128xf32> to vector<1x8x128xf32>
    tpu.vector_store %arg5[%c1, %c0_33, %c0_34], %107 {strides = array<i32>} : memref<2x8x128xf32, #tpu.memory_space<vmem>>, vector<1x8x128xf32>,
    %108 = vector.extract_strided_slice %77 {offsets = [1, 0], sizes = [1, 128], strides = [1, 1]} : vector<2x128xf32> to vector<1x128xf32>
    %109 = vector.extract_strided_slice %97 {offsets = [7, 0], sizes = [1, 128], strides = [1, 1]} : vector<8x128xf32> to vector<1x128xf32>
    %110 = arith.addf %108, %109 : vector<1x128xf32>
    %c1_35 = arith.constant 1 : index
    %c0_36 = arith.constant 0 : index
    %111 = vector.load %arg6[%c1_35, %c0_36] : memref<2x128xf32, #tpu.memory_space<vmem>>, vector<1x128xf32>
    tpu.vector_store %arg6[%c1_35, %c0_36], %110 {strides = array<i32>} : memref<2x128xf32, #tpu.memory_space<vmem>>, vector<1x128xf32>,
    return
  }
  func.func @transform_0(%arg0: i32, %arg1: i32) -> (i32, i32, i32) {
    %c0_i32 = arith.constant 0 : i32
    %c0_i32_0 = arith.constant 0 : i32
    return %arg0, %arg1, %c0_i32 : i32, i32, i32
  }
  func.func @transform_1(%arg0: i32, %arg1: i32) -> (i32, i32) {
    %c0_i32 = arith.constant 0 : i32
    %c0_i32_0 = arith.constant 0 : i32
    %c0_i32_1 = arith.constant 0 : i32
    return %c0_i32, %c0_i32_0 : i32, i32
  }
  func.func @transform_2(%arg0: i32, %arg1: i32) -> (i32, i32) {
    %c0_i32 = arith.constant 0 : i32
    %c0_i32_0 = arith.constant 0 : i32
    return %arg0, %c0_i32 : i32, i32
  }
  func.func @transform_3(%arg0: i32, %arg1: i32) -> (i32, i32, i32) {
    %c0_i32 = arith.constant 0 : i32
    %c0_i32_0 = arith.constant 0 : i32
    return %arg0, %arg1, %c0_i32 : i32, i32, i32
  }
}

</mosaic_0001>

<bundles_post_ra>
// kernel: tpu_custom_call.1
= control target key start
LH: loop header
LB: loop body
LE: loop exit
PB: predicated region body
PF: predicated region fallthrough
CT: control target
= control target key end

     0   :  { %8 = vsyncpa [#allocation4], 0  ;;  %s2715_s0 = inlined_call_operand.hbm [shape: f32[2,8,128], index: 0, kind: input, shape index: {}]   ;;  %s2716_s1 = inlined_call_operand.hbm [shape: f32[128,384], index: 1, kind: input, shape index: {}]   ;;  %s2717_s2 = inlined_call_operand.hbm [shape: f32[2,128], index: 2, kind: input, shape index: {}]   ;;  %s2718_s3 = inlined_call_operand.hbm [shape: f32[2,8,128], index: 3, kind: output, shape index: {}]  }
   0x1   :  { %9 = vsyncpa [#allocation7], 0  ;;  %s28_s14 = sshll.u32 %s2716_s1, 4  ;;  %s29_s14 = int_to_ptr.hbm [resolvable:$true] %s28_s14 }
   0x2   :  { %10 = vsyncpa [#allocation5], 0  ;;  %s1844_s15 = smov [#allocation6]   ;;  %s15_s19 = sshll.u32 %s2715_s0, 4  ;;  %s16_s19 = int_to_ptr.hbm [resolvable:$true] %s15_s19 }
   0x3   :  { %s30_s16 = sshll.u32 %s1844_s15, 4  ;;  %s1845_s20 = smov 384   ;;  %s31_s16 = int_to_ptr.vmem [resolvable:$true] %s30_s16 }
   0x4   :  { %s1846_s21 = smov 24   ;;  %s1847_s22 = smov [#allocation3]  }
   0x5   :  { %36 = dma.hbm_to_vmem [thread:$0]  %s29_s14, 6144, %s31_s16, [#allocation7], %s1845_s20, %s1845_s20, %s1846_s21  }
   0x6   :  { %s17_s23 = sshll.u32 %s1847_s22, 4  ;;  %s1848_s24 = smov 128   ;;  %s18_s23 = int_to_ptr.vmem [resolvable:$true] %s17_s23 }
   0x7   :  { %s1849_s25 = smov 8   ;;  %s42_s27 = sshll.u32 %s2717_s2, 4  ;;  %s43_s27 = int_to_ptr.hbm [resolvable:$true] %s42_s27 }
   0x8   :  { %23 = dma.hbm_to_vmem [thread:$0]  %s16_s19, 256, %s18_s23, [#allocation4], %s1848_s24, %s1848_s24, %s1849_s25  }
   0x9   :  { %s1850_s28 = smov [#allocation8]  }
   0xa   :  { %s44_s0 = sshll.u32 %s1850_s28, 4  ;;  %s45_s0 = int_to_ptr.vmem [resolvable:$true] %s44_s0 }
   0xb   :  { %47 = dma.hbm_to_vmem [thread:$0]  %s43_s27, 32, %s45_s0, [#allocation7]  }
   0xc   :  { %1838 = dma.done.wait [#allocation4], 256  }
   0xd   :  { %1839 = vsyncadd [#allocation4], 4294967040 }
   0xe   :  { %1840 = dma.done.wait [#allocation7], 6176  }
   0xf   :  { %1841 = vsyncadd [#allocation7], 4294961120  ;;  %v112_v0 = vld [vmem:[#allocation6 + $0x168] sm:$0xff]  ;;  %v109_v1 = vld [vmem:[#allocation6 + $0x150] sm:$0xff]  ;;  %vm1345_vm1 = vcmask 64512   ;;  %s1852_s2 = smov [#allocation9]  }
  0x10   :  { %v106_v2 = vld [vmem:[#allocation6 + $0x138] sm:$0xff]  ;;  %v1885_v3 = vand.u32 4294901760, %v112_v0  ;;  %v1887_v4 = vand.u32 4294901760, %v109_v1  ;;  %v103_v6 = vld [vmem:[#allocation6 + $0x120] sm:$0xff]  ;;  %v100_v7 = vld [vmem:[#allocation6 + $0x108] sm:$0xff]  ;;  %s1668_s29 = sshll.u32 %s1852_s2, 4  ;;  %s1669_s29 = int_to_ptr.vmem [resolvable:$true] %s1668_s29 }
  0x11   :  { %v1889_v5 = vand.u32 4294901760, %v106_v2  ;;  %v97_v8 = vld [vmem:[#allocation6 + $0xf0] sm:$0xff]  ;;  %v1891_v9 = vand.u32 4294901760, %v103_v6  ;;  %v1893_v10 = vand.u32 4294901760, %v100_v7  ;;  %v94_v12 = vld [vmem:[#allocation6 + $0xd8] sm:$0xff]  ;;  %v91_v13 = vld [vmem:[#allocation6 + $0xc0] sm:$0xff] }
  0x12   :  { %v1895_v11 = vand.u32 4294901760, %v97_v8  ;;  %116 = vmatpush.msra.mxu0 %v1885_v3  ;;  %v1899_v14 = vsub.f32 %v112_v0, %v1885_v3  ;;  %v1902_v15 = vsub.f32 %v109_v1, %v1887_v4  ;;  %329 = vmatpush.msra.mxu3 %v1885_v3  ;;  %v1908_v17 = vand.u32 4294901760, %v94_v12  ;;  %v88_v18 = vld [vmem:[#allocation6 + $0xa8] sm:$0xff]  ;;  %v85_v26 = vld [vmem:[#allocation6 + $0x90] sm:$0xff]  ;;  %v82_v36 = vld [vmem:[#allocation6 + $0x78] sm:$0xff]  ;;  %s1670_s5 = sshll.u32 %s2718_s3, 4  ;;  %s1671_s5 = int_to_ptr.hbm [resolvable:$true] %s1670_s5 }
  0x13   :  { %v1906_v16 = vsub.f32 %v106_v2, %v1889_v5  ;;  %v1911_v19 = vsub.f32 %v103_v6, %v1891_v9  ;;  %v1914_v20 = vsub.f32 %v100_v7, %v1893_v10  ;;  %v1916_v21 = vand.u32 4294901760, %v91_v13  ;;  %v79_v42 = vld [vmem:[#allocation6 + $0x60] sm:$0xff]  ;;  %v76_v48 = vld [vmem:[#allocation6 + $0x48] sm:$0xff]  ;;  %v73_v54 = vld [vmem:[#allocation6 + $0x30] sm:$0xff] }
  0x14   :  { %118 = vmatpush.msra.mxu0 %v1887_v4  ;;  %271 = vmatpush.msra.mxu2 %v1899_v14  ;;  %v166_v22 = vand.u32 4294901760, %v1899_v14  ;;  %v2735_v23 = vand.u32 4294901760, %v1902_v15  ;;  %v1924_v25 = vsub.f32 %v97_v8, %v1895_v11  ;;  %v1928_v28 = vand.u32 4294901760, %v88_v18  ;;  %v113_v59 = vld [vmem:[#allocation6 + $0x170] sm:$0xff]  ;;  %v70_v61 = vld [vmem:[#allocation6 + $0x18] sm:$0xff]  ;;  %v67_v7 = vld [vmem:[#allocation6] sm:$0xff] }
  0x15   :  { %v2732_v24 = vand.u32 4294901760, %v1906_v16  ;;  %331 = vmatpush.msra.mxu3 %v1887_v4  ;;  %v2731_v27 = vand.u32 4294901760, %v1911_v19  ;;  %v1931_v29 = vsub.f32 %v94_v12, %v1908_v17  ;;  %v2728_v33 = vand.u32 4294901760, %v1914_v20  ;;  %v110_v2 = vld [vmem:[#allocation6 + $0x158] sm:$0xff] }
  0x16   :  { %120 = vmatpush.msra.mxu0 %v1889_v5  ;;  %274 = vmatpush.msra.mxu2 %v1902_v15  ;;  %v167_v30 = vsub.f32 %v1899_v14, %v166_v22  ;;  %v173_v31 = vsub.f32 %v1902_v15, %v2735_v23  ;;  %v1946_v34 = vand.u32 4294901760, %v85_v26  ;;  %v1949_v35 = vsub.f32 %v91_v13, %v1916_v21 }
  0x17   :  { %v179_v32 = vsub.f32 %v1906_v16, %v2732_v24  ;;  %333 = vmatpush.msra.mxu3 %v1889_v5  ;;  %v185_v39 = vsub.f32 %v1911_v19, %v2731_v27  ;;  %v2727_v40 = vand.u32 4294901760, %v1924_v25  ;;  %v2725_v41 = vand.u32 4294901760, %v1931_v29 }
  0x18   :  { %122 = vmatpush.msra.mxu0 %v1891_v9  ;;  %v168_v37 = vand.u32 4294901760, %v167_v30  ;;  %277 = vmatpush.msra.mxu2 %v1906_v16  ;;  %v174_v38 = vand.u32 4294901760, %v173_v31  ;;  %v191_v44 = vsub.f32 %v1914_v20, %v2728_v33  ;;  %v1963_v45 = vand.u32 4294901760, %v82_v36  ;;  %v107_v30 = vld [vmem:[#allocation6 + $0x140] sm:$0xff] }
  0x19   :  { %335 = vmatpush.msra.mxu3 %v1891_v9  ;;  %v180_v43 = vand.u32 4294901760, %v179_v32  ;;  %v1966_v46 = vsub.f32 %v88_v18, %v1928_v28  ;;  %v2724_v47 = vand.u32 4294901760, %v1949_v35  ;;  %v186_v49 = vand.u32 4294901760, %v185_v39 }
  0x1a   :  { %124 = vmatpush.msra.mxu0 %v1893_v10  ;;  %169 = vmatpush.msra.mxu1 %v168_v37  ;;  %v197_v50 = vsub.f32 %v1924_v25, %v2727_v40  ;;  %v1975_v51 = vand.u32 4294901760, %v79_v42  ;;  %v1978_v52 = vsub.f32 %v85_v26, %v1946_v34  ;;  %v203_v53 = vsub.f32 %v1931_v29, %v2725_v41 }
  0x1b   :  { %280 = vmatpush.msra.mxu2 %v1911_v19  ;;  %337 = vmatpush.msra.mxu3 %v1893_v10  ;;  %v192_v55 = vand.u32 4294901760, %v191_v44  ;;  %v1986_v56 = vand.u32 4294901760, %v76_v48  ;;  %v2722_v57 = vand.u32 4294901760, %v1966_v46  ;;  %v1990_v58 = vsub.f32 %v82_v36, %v1963_v45 }
  0x1c   :  { %126 = vmatpush.msra.mxu0 %v1895_v11  ;;  %175 = vmatpush.msra.mxu1 %v174_v38  ;;  %v209_v60 = vsub.f32 %v1949_v35, %v2724_v47  ;;  %v198_v62 = vand.u32 4294901760, %v197_v50  ;;  %v1998_v63 = vand.u32 4294901760, %v73_v54  ;;  %v2721_v0 = vand.u32 4294901760, %v1978_v52 }
  0x1d   :  { %283 = vmatpush.msra.mxu2 %v1914_v20  ;;  %339 = vmatpush.msra.mxu3 %v1895_v11  ;;  %v2002_v1 = vsub.f32 %v79_v42, %v1975_v51  ;;  %v204_v6 = vand.u32 4294901760, %v203_v53  ;;  %v2006_v8 = vand.u32 4294901760, %v113_v59  ;;  %v215_v12 = vsub.f32 %v1966_v46, %v2722_v57  ;;  %v104_v42 = vld [vmem:[#allocation6 + $0x128] sm:$0xff]  ;;  %v95_v57 = vld [vmem:[#allocation6 + $0xe0] sm:$0xff] }
  0x1e   :  { %128 = vmatpush.msra.mxu0 %v1908_v17  ;;  %181 = vmatpush.msra.mxu1 %v180_v43  ;;  %v2012_v13 = vand.u32 4294901760, %v70_v61  ;;  %v2720_v18 = vand.u32 4294901760, %v1990_v58  ;;  %v2016_v26 = vsub.f32 %v76_v48, %v1986_v56  ;;  %v210_v31 = vand.u32 4294901760, %v209_v60 }
  0x1f   :  { %286 = vmatpush.msra.mxu2 %v1924_v25  ;;  %341 = vmatpush.msra.mxu3 %v1908_v17  ;;  %v2020_v32 = vand.u32 4294901760, %v110_v2  ;;  %v221_v36 = vsub.f32 %v1978_v52, %v2721_v0  ;;  %v2026_v37 = vand.u32 4294901760, %v67_v7  ;;  %v2719_v38 = vand.u32 4294901760, %v2002_v1 }
  0x20   :  { %130 = vmatpush.msra.mxu0 %v1916_v21  ;;  %187 = vmatpush.msra.mxu1 %v186_v49  ;;  %v2030_v39 = vsub.f32 %v73_v54, %v1998_v63  ;;  %v2035_v43 = vsub.f32 %v113_v59, %v2006_v8  ;;  %v2037_v44 = vand.u32 4294901760, %v107_v30  ;;  %v216_v48 = vand.u32 4294901760, %v215_v12  ;;  %v101_v59 = vld [vmem:[#allocation6 + $0x110] sm:$0xff] }
  0x21   :  { %289 = vmatpush.msra.mxu2 %v1931_v29  ;;  %343 = vmatpush.msra.mxu3 %v1916_v21  ;;  %2742 = vst [vmem:[#allocation13_spill] sm:$0xff] %v2020_v32  ;;  %v227_v49 = vsub.f32 %v1990_v58, %v2720_v18  ;;  %v2723_v50 = vand.u32 4294901760, %v2016_v26  ;;  %v2045_v53 = vsub.f32 %v70_v61, %v2012_v13  ;;  %v222_v60 = vand.u32 4294901760, %v221_v36 }
  0x22   :  { %132 = vmatpush.msra.mxu0 %v1928_v28  ;;  %193 = vmatpush.msra.mxu1 %v192_v55  ;;  %2743 = vst [vmem:[#allocation14_spill] sm:$0xff] %v2026_v37  ;;  %v2050_v54 = vsub.f32 %v110_v2, %v2020_v32  ;;  %v2052_v55 = vand.u32 4294901760, %v104_v42  ;;  %v2726_v61 = vand.u32 4294901760, %v2030_v39  ;;  %v2729_v2 = vand.u32 4294901760, %v2035_v43 }
  0x23   :  { %292 = vmatpush.msra.mxu2 %v1949_v35  ;;  %345 = vmatpush.msra.mxu3 %v1928_v28  ;;  %v2066_v12 = vsub.f32 %v107_v30, %v2037_v44  ;;  %v228_v36 = vand.u32 4294901760, %v227_v49  ;;  %v2073_v18 = vand.u32 4294901760, %v101_v59  ;;  %v2101_v33 = vand.u32 4294901760, %v95_v57 }
  0x24   :  { %134 = vmatpush.msra.mxu0 %v1946_v34  ;;  %199 = vmatpush.msra.mxu1 %v198_v62  ;;  %v233_v62 = vsub.f32 %v2002_v1, %v2719_v38  ;;  %v239_v38 = vsub.f32 %v2016_v26, %v2723_v50  ;;  %v2733_v30 = vand.u32 4294901760, %v2050_v54  ;;  %v2079_v0 = vsub.f32 %v104_v42, %v2052_v55 }
  0x25   :  { %295 = vmatpush.msra.mxu2 %v1966_v46  ;;  %347 = vmatpush.msra.mxu3 %v1946_v34  ;;  %v245_v49 = vsub.f32 %v2030_v39, %v2726_v61  ;;  %v539_v42 = vsub.f32 %v2035_v43, %v2729_v2  ;;  %v2736_v41 = vand.u32 4294901760, %v2066_v12  ;;  %v2099_v40 = vsub.f32 %v101_v59, %v2073_v18 }
  0x26   :  { %136 = vmatpush.msra.mxu0 %v1963_v45  ;;  %205 = vmatpush.msra.mxu1 %v204_v6  ;;  %v2060_v6 = vsub.f32 %v67_v7, %v2026_v37  ;;  %v2730_v7 = vand.u32 4294901760, %v2045_v53  ;;  %v545_v2 = vsub.f32 %v2050_v54, %v2733_v30  ;;  %v2744_v14 = vand.u32 4294901760, %v1902_v15 }
  0x27   :  { %298 = vmatpush.msra.mxu2 %v1978_v52  ;;  %349 = vmatpush.msra.mxu3 %v1963_v45  ;;  %v540_v30 = vand.u32 4294901760, %v539_v42  ;;  %v2745_v42 = vand.u32 4294901760, %v2079_v0  ;;  %v2746_v15 = vand.u32 4294901760, %v1906_v16  ;;  %v2748_v16 = vand.u32 4294901760, %v1911_v19 }
  0x28   :  { %138 = vmatpush.msra.mxu0 %v1975_v51  ;;  %211 = vmatpush.msra.mxu1 %v210_v31  ;;  %v98_v31 = vld [vmem:[#allocation6 + $0xf8] sm:$0xff]  ;;  %v2734_v50 = vand.u32 4294901760, %v2060_v6  ;;  %v251_v61 = vsub.f32 %v2045_v53, %v2730_v7  ;;  %v246_v7 = vand.u32 4294901760, %v245_v49  ;;  %v89_v49 = vld [vmem:[#allocation6 + $0xb0] sm:$0xff]  ;;  %v2750_v19 = vand.u32 4294901760, %v1914_v20 }
  0x29   :  { %301 = vmatpush.msra.mxu2 %v1990_v58  ;;  %351 = vmatpush.msra.mxu3 %v1975_v51  ;;  %v2086_v47 = vand.u32 4294901760, %v98_v31  ;;  %v77_v20 = vld [vmem:[#allocation6 + $0x50] sm:$0xff] }
  0x2a   :  { %140 = vmatpush.msra.mxu0 %v1986_v56  ;;  %217 = vmatpush.msra.mxu1 %v216_v48  ;;  %v234_v48 = vand.u32 4294901760, %v233_v62  ;;  %v240_v62 = vand.u32 4294901760, %v239_v38  ;;  %v65_v38 = vld [vmem:[#allocation3] sm:$0xff]  ;;  %v257_v59 = vsub.f32 %v2060_v6, %v2734_v50  ;;  %v2127_v50 = vsub.f32 %v95_v57, %v2101_v33 }
  0x2b   :  { %304 = vmatpush.msra.mxu2 %v2002_v1  ;;  %353 = vmatpush.msra.mxu3 %v1986_v56  ;;  %v2114_v27 = vsub.f32 %v98_v31, %v2086_v47  ;;  %v2129_v23 = vand.u32 4294901760, %v65_v38  ;;  %v2139_v31 = vand.u32 4294901760, %v89_v49 }
  0x2c   :  { %142 = vmatpush.msra.mxu0 %v1998_v63  ;;  %223 = vmatpush.msra.mxu1 %v222_v60  ;;  %v92_v60 = vld [vmem:[#allocation6 + $0xc8] sm:$0xff] }
  0x2d   :  { %307 = vmatpush.msra.mxu2 %v2016_v26  ;;  %355 = vmatpush.msra.mxu3 %v1998_v63  ;;  %v2116_v24 = vand.u32 4294901760, %v92_v60  ;;  %v2152_v57 = vsub.f32 %v65_v38, %v2129_v23 }
  0x2e   :  { %144 = vmatpush.msra.mxu0 %v2012_v13  ;;  %229 = vmatpush.msra.mxu1 %v228_v36  ;;  %v252_v36 = vand.u32 4294901760, %v251_v61  ;;  %v86_v61 = vld [vmem:[#allocation6 + $0x98] sm:$0xff] }
  0x2f   :  { %310 = vmatpush.msra.mxu2 %v2030_v39  ;;  %357 = vmatpush.msra.mxu3 %v2012_v13 }
  0x30   :  { %146 = vmatpush.msra.mxu0 %v2026_v37  ;;  %235 = vmatpush.msra.mxu1 %v234_v48  ;;  %v551_v48 = vsub.f32 %v2066_v12, %v2736_v41  ;;  %v258_v41 = vand.u32 4294901760, %v257_v59 }
  0x31   :  { %313 = vmatpush.msra.mxu2 %v2045_v53  ;;  %359 = vmatpush.msra.mxu3 %v2026_v37  ;;  %v2142_v37 = vsub.f32 %v92_v60, %v2116_v24  ;;  %v2154_v60 = vand.u32 4294901760, %v86_v61 }
  0x32   :  { %376 = vmatpush.msrb.mxu0 %v166_v22  ;;  %241 = vmatpush.msra.mxu1 %v240_v62  ;;  %v546_v22 = vand.u32 4294901760, %v545_v2  ;;  %v557_v62 = vsub.f32 %v2079_v0, %v2745_v42  ;;  %v552_v2 = vand.u32 4294901760, %v551_v48  ;;  %v80_v42 = vld [vmem:[#allocation6 + $0x68] sm:$0xff] }
  0x33   :  { %316 = vmatpush.msra.mxu2 %v2060_v6  ;;  %541 = vmatpush.msrb.mxu3 %v540_v30 }
  0x34   :  { %380 = vmatpush.msrb.mxu0 %v2744_v14  ;;  %247 = vmatpush.msra.mxu1 %v246_v7  ;;  %v83_v14 = vld [vmem:[#allocation6 + $0x80] sm:$0xff]  ;;  %v2747_v7 = vand.u32 4294901760, %v2099_v40  ;;  %v558_v30 = vand.u32 4294901760, %v557_v62 }
  0x35   :  { %488 = vmatpush.msrb.mxu2 %v2006_v8  ;;  %547 = vmatpush.msrb.mxu3 %v546_v22  ;;  %v2166_v38 = vand.u32 4294901760, %v83_v14  ;;  %v2751_v22 = vand.u32 4294901760, %v2127_v50 }
  0x36   :  { %384 = vmatpush.msrb.mxu0 %v2746_v15  ;;  %253 = vmatpush.msra.mxu1 %v252_v36  ;;  %v563_v59 = vsub.f32 %v2099_v40, %v2747_v7  ;;  %v2749_v36 = vand.u32 4294901760, %v2114_v27  ;;  %v2740_v15 = vand.u32 4294901760, %v2142_v37  ;;  %v2164_v7 = vsub.f32 %v89_v49, %v2139_v31 }
  0x37   :  { %490 = vmatpush.msrb.mxu2 %v2020_v32  ;;  %v66_v32 = vld [vmem:[#allocation3 + $0x8] sm:$0xff]  ;;  %553 = vmatpush.msrb.mxu3 %v552_v2  ;;  %v575_v62 = vsub.f32 %v2127_v50, %v2751_v22  ;;  %v2176_v49 = vand.u32 4294901760, %v2152_v57 }
  0x38   :  { %388 = vmatpush.msrb.mxu0 %v2748_v16  ;;  %259 = vmatpush.msra.mxu1 %v258_v41  ;;  %v569_v48 = vsub.f32 %v2114_v27, %v2749_v36  ;;  %v564_v41 = vand.u32 4294901760, %v563_v59  ;;  %v2179_v16 = vsub.f32 %v86_v61, %v2154_v60  ;;  %v2752_v36 = vand.u32 4294901760, %v1924_v25  ;;  %v74_v22 = vld [vmem:[#allocation6 + $0x38] sm:$0xff] }
  0x39   :  { %492 = vmatpush.msrb.mxu2 %v2037_v44  ;;  %v2186_v2 = vand.u32 4294901760, %v66_v32  ;;  %559 = vmatpush.msrb.mxu3 %v558_v30  ;;  %v2741_v61 = vand.u32 4294901760, %v2164_v7  ;;  %v2194_v25 = vsub.f32 %v83_v14, %v2166_v38  ;;  %v576_v30 = vand.u32 4294901760, %v575_v62 }
  0x3a   :  { %392 = vmatpush.msrb.mxu0 %v2750_v19  ;;  %447 = vmatpush.msrb.mxu1 %v1885_v3  ;;  %v2184_v3 = vand.u32 4294901760, %v80_v42  ;;  %v570_v59 = vand.u32 4294901760, %v569_v48  ;;  %v581_v19 = vsub.f32 %v2142_v37, %v2740_v15  ;;  %v150_v48 = vsub.f32 %v2152_v57, %v2176_v49 }
  0x3b   :  { %494 = vmatpush.msrb.mxu2 %v2052_v55  ;;  %565 = vmatpush.msrb.mxu3 %v564_v41  ;;  %v2203_v15 = vand.u32 4294901760, %v77_v20  ;;  %v2754_v14 = vand.u32 4294901760, %v1949_v35  ;;  %v71_v41 = vld [vmem:[#allocation6 + $0x20] sm:$0xff]  ;;  %v598_v35 = vand.u32 4294901760, %v2194_v25 }
  0x3c   :  { %396 = vmatpush.msrb.mxu0 %v2752_v36  ;;  %449 = vmatpush.msrb.mxu1 %v1887_v4  ;;  %v2753_v4 = vand.u32 4294901760, %v1931_v29  ;;  %v592_v36 = vand.u32 4294901760, %v2179_v16  ;;  %v2209_v29 = vsub.f32 %v80_v42, %v2184_v3  ;;  %v582_v62 = vand.u32 4294901760, %v581_v19 }
  0x3d   :  { %496 = vmatpush.msrb.mxu2 %v2073_v18  ;;  %571 = vmatpush.msrb.mxu3 %v570_v59  ;;  %v2231_v59 = vsub.f32 %v77_v20, %v2203_v15  ;;  %v2233_v19 = vand.u32 4294901760, %v71_v41  ;;  %v599_v20 = vsub.f32 %v2194_v25, %v598_v35 }
  0x3e   :  { %400 = vmatpush.msrb.mxu0 %v2753_v4  ;;  %451 = vmatpush.msrb.mxu1 %v1889_v5  ;;  %v2212_v5 = vsub.f32 %v66_v32, %v2186_v2  ;;  %v587_v4 = vsub.f32 %v2164_v7, %v2741_v61  ;;  %v2225_v32 = vand.u32 4294901760, %v150_v48  ;;  %v593_v42 = vsub.f32 %v2179_v16, %v592_v36  ;;  %v68_v61 = vld [vmem:[#allocation6 + $0x8] sm:$0xff] }
  0x3f   :  { %498 = vmatpush.msrb.mxu2 %v2086_v47  ;;  %577 = vmatpush.msrb.mxu3 %v576_v30 }
  0x40   :  { %404 = vmatpush.msrb.mxu0 %v2754_v14  ;;  %453 = vmatpush.msrb.mxu1 %v1891_v9  ;;  %v2219_v14 = vand.u32 4294901760, %v74_v22  ;;  %v2755_v9 = vand.u32 4294901760, %v1966_v46  ;;  %v2756_v46 = vand.u32 4294901760, %v1978_v52  ;;  %v2240_v30 = vand.u32 4294901760, %v2212_v5 }
  0x41   :  { %500 = vmatpush.msrb.mxu2 %v2101_v33  ;;  %583 = vmatpush.msrb.mxu3 %v582_v62  ;;  %v588_v48 = vand.u32 4294901760, %v587_v4  ;;  %v2757_v52 = vand.u32 4294901760, %v1990_v58  ;;  %v594_v62 = vand.u32 4294901760, %v593_v42  ;;  %v610_v4 = vand.u32 4294901760, %v2231_v59 }
  0x42   :  { %408 = vmatpush.msrb.mxu0 %v2755_v9  ;;  %455 = vmatpush.msrb.mxu1 %v1893_v10  ;;  %v604_v10 = vand.u32 4294901760, %v2209_v29  ;;  %v2247_v9 = vsub.f32 %v74_v22, %v2219_v14  ;;  %v2758_v22 = vand.u32 4294901760, %v2002_v1  ;;  %v158_v58 = vsub.f32 %v2212_v5, %v2240_v30 }
  0x43   :  { %502 = vmatpush.msrb.mxu2 %v2116_v24  ;;  %152 = vmatmul.f32.vlgmr.msra.gmra.mxu0 %v2225_v32  ;;  %v600_v42 = vand.u32 4294901760, %v599_v20  ;;  %v611_v1 = vsub.f32 %v2231_v59, %v610_v4  ;;  %v2760_v20 = vand.u32 4294901760, %v2030_v39 }
  0x44   :  { %412 = vmatpush.msrb.mxu0 %v2756_v46  ;;  %457 = vmatpush.msrb.mxu1 %v1895_v11  ;;  %v2252_v11 = vand.u32 4294901760, %v68_v61  ;;  %v2258_v46 = vsub.f32 %v71_v41, %v2233_v19  ;;  %v2759_v41 = vand.u32 4294901760, %v2016_v26 }
  0x45   :  { %504 = vmatpush.msrb.mxu2 %v2139_v31  ;;  %589 = vmatpush.msrb.mxu3 %v588_v48 }
  0x46   :  { %416 = vmatpush.msrb.mxu0 %v2757_v52  ;;  %459 = vmatpush.msrb.mxu1 %v1908_v17  ;;  %v605_v17 = vsub.f32 %v2209_v29, %v604_v10  ;;  %v616_v52 = vand.u32 4294901760, %v2247_v9  ;;  %v622_v48 = vand.u32 4294901760, %v2258_v46 }
  0x47   :  { %506 = vmatpush.msrb.mxu2 %v2154_v60  ;;  %261 = vmatmul.f32.vlgmr.msra.gmra.mxu1 %v2129_v23 }
  0x48   :  { %420 = vmatpush.msrb.mxu0 %v2758_v22  ;;  %461 = vmatpush.msrb.mxu1 %v1916_v21  ;;  %v2274_v21 = vsub.f32 %v68_v61, %v2252_v11  ;;  %v606_v26 = vand.u32 4294901760, %v605_v17  ;;  %v2284_v22 = vand.u32 4294901760, %v158_v58  ;;  %v2761_v61 = vand.u32 4294901760, %v2045_v53 }
  0x49   :  { %508 = vmatpush.msrb.mxu2 %v2166_v38  ;;  %595 = vmatpush.msrb.mxu3 %v594_v62  ;;  %v623_v62 = vsub.f32 %v2258_v46, %v622_v48  ;;  %v2762_v17 = vand.u32 4294901760, %v2060_v6  ;;  %v2763_v6 = vand.u32 4294901760, %v2035_v43 }
  0x4a   :  { %424 = vmatpush.msrb.mxu0 %v2759_v41  ;;  %463 = vmatpush.msrb.mxu1 %v1928_v28  ;;  %v617_v28 = vsub.f32 %v2247_v9, %v616_v52  ;;  %v628_v39 = vand.u32 4294901760, %v2274_v21  ;;  %v93_v41 = vld [vmem:[#allocation6 + $0xd0] sm:$0xff] }
  0x4b   :  { %510 = vmatpush.msrb.mxu2 %v2184_v3  ;;  %601 = vmatpush.msrb.mxu3 %v600_v42  ;;  %v624_v58 = vand.u32 4294901760, %v623_v62  ;;  %v2769_v42 = vand.u32 4294901760, %v2099_v40 }
  0x4c   :  { %428 = vmatpush.msrb.mxu0 %v2760_v20  ;;  %465 = vmatpush.msrb.mxu1 %v1946_v34  ;;  %v612_v34 = vand.u32 4294901760, %v611_v1  ;;  %v618_v53 = vand.u32 4294901760, %v617_v28 }
  0x4d   :  { %319 = vmatmul.f32.vlgmr.msra.gmra.mxu2 %v2152_v57  ;;  %607 = vmatpush.msrb.mxu3 %v606_v26 }
  0x4e   :  { %432 = vmatpush.msrb.mxu0 %v2761_v61  ;;  %467 = vmatpush.msrb.mxu1 %v1963_v45  ;;  %v629_v45 = vsub.f32 %v2274_v21, %v628_v39 }
  0x4f   :  { %512 = vmatpush.msrb.mxu2 %v2203_v15  ;;  %160 = vmatmul.f32.gmra.mxu0 %v2284_v22 }
  0x50   :  { %363 = vmatmul.f32.vlgmr.msra.gmra.mxu3 %v2176_v49  ;;  %436 = vmatpush.msrb.mxu0 %v2762_v17 }
  0x51   :  { %469 = vmatpush.msrb.mxu1 %v1975_v51  ;;  %514 = vmatpush.msrb.mxu2 %v2219_v14  ;;  %v630_v51 = vand.u32 4294901760, %v629_v45 }
  0x52   :  { %613 = vmatpush.msrb.mxu3 %v612_v34  ;;  %265 = vmatmul.f32.gmra.mxu1 %v2186_v2 }
  0x53   :  { %643 = vmatpush.msra.mxu0 %v2035_v43  ;;  %471 = vmatpush.msrb.mxu1 %v1986_v56  ;;  %v2764_v56 = vand.u32 4294901760, %v2050_v54  ;;  %v2767_v43 = vld [vmem:[#allocation13_spill] sm:$0xff] }
  0x54   :  { %516 = vmatpush.msrb.mxu2 %v2233_v19  ;;  %619 = vmatpush.msrb.mxu3 %v618_v53 }
  0x55   :  { %646 = vmatpush.msra.mxu0 %v2050_v54  ;;  %473 = vmatpush.msrb.mxu1 %v1998_v63  ;;  %v2765_v63 = vld [vmem:[#allocation14_spill] sm:$0xff]  ;;  %v2768_v54 = vand.u32 4294901760, %v2079_v0 }
  0x56   :  { %518 = vmatpush.msrb.mxu2 %v2252_v11  ;;  %625 = vmatpush.msrb.mxu3 %v624_v58  ;;  %v81_v58 = vld [vmem:[#allocation6 + $0x70] sm:$0xff] }
  0x57   :  { %324 = vmatmul.f32.gmra.mxu2 %v2212_v5  ;;  %649 = vmatpush.msra.mxu0 %v2066_v12 }
  0x58   :  { %748 = vmatpush.msra.mxu2 %v2763_v6  ;;  %475 = vmatpush.msrb.mxu1 %v2012_v13  ;;  %v2766_v13 = vand.u32 4294901760, %v2066_v12  ;;  %v102_v12 = vld [vmem:[#allocation6 + $0x118] sm:$0xff] }
  0x59   :  { %631 = vmatpush.msrb.mxu3 %v630_v51  ;;  %438 = vmatmul.f32.vlgmr.msrb.gmra.mxu0 %v2129_v23 }
  0x5a   :  { %369 = vmatmul.f32.gmra.mxu3 %v2240_v30  ;;  %652 = vmatpush.msra.mxu0 %v2079_v0  ;;  %v114_v0 = vld [vmem:[#allocation6 + $0x178] sm:$0xff] }
  0x5b   :  { %752 = vmatpush.msra.mxu2 %v2764_v56  ;;  %819 = vmatpush.msra.mxu3 %v2006_v8 }
  0x5c   :  { %477 = vmatpush.msrb.mxu1 %v2765_v63  ;;  %655 = vmatpush.msra.mxu0 %v2099_v40  ;;  %v2771_v40 = vand.u32 4294901760, %v2127_v50 }
  0x5d   :  { %479 = vmatmul.f32.vlgmr.msrb.gmra.mxu1 %v2129_v23  ;;  %756 = vmatpush.msra.mxu2 %v2766_v13  ;;  %v78_v13 = vld [vmem:[#allocation6 + $0x58] sm:$0xff] }
  0x5e   :  { %701 = vmatpush.msra.mxu1 %v2006_v8  ;;  %821 = vmatpush.msra.mxu3 %v2767_v43  ;;  %v2770_v8 = vand.u32 4294901760, %v2114_v27 }
  0x5f   :  { %658 = vmatpush.msra.mxu0 %v2114_v27  ;;  %760 = vmatpush.msra.mxu2 %v2768_v54  ;;  %v2772_v27 = vand.u32 4294901760, %v2142_v37 }
  0x60   :  { %703 = vmatpush.msra.mxu1 %v2767_v43  ;;  %823 = vmatpush.msra.mxu3 %v2037_v44 }
  0x61   :  { %661 = vmatpush.msra.mxu0 %v2127_v50  ;;  %764 = vmatpush.msra.mxu2 %v2769_v42 }
  0x62   :  { %705 = vmatpush.msra.mxu1 %v2037_v44  ;;  %825 = vmatpush.msra.mxu3 %v2052_v55  ;;  %v2773_v44 = vand.u32 4294901760, %v2164_v7 }
  0x63   :  { %442 = vmatmul.f32.gmra.mxu0 %v2186_v2  ;;  %768 = vmatpush.msra.mxu2 %v2770_v8  ;;  %v2493_v8 = vand.u32 4294901760, %v81_v58 }
  0x64   :  { %664 = vmatpush.msra.mxu0 %v2142_v37  ;;  %707 = vmatpush.msra.mxu1 %v2052_v55  ;;  %v108_v37 = vld [vmem:[#allocation6 + $0x148] sm:$0xff] }
  0x65   :  { %827 = vmatpush.msra.mxu3 %v2073_v18  ;;  %483 = vmatmul.f32.gmra.mxu1 %v2186_v2  ;;  %v2384_v55 = vand.u32 4294901760, %v108_v37 }
  0x66   :  { %667 = vmatpush.msra.mxu0 %v2164_v7  ;;  %709 = vmatpush.msra.mxu1 %v2073_v18  ;;  %v111_v18 = vld [vmem:[#allocation6 + $0x160] sm:$0xff] }
  0x67   :  { %772 = vmatpush.msra.mxu2 %v2771_v40  ;;  %829 = vmatpush.msra.mxu3 %v2086_v47  ;;  %v2374_v50 = vand.u32 4294901760, %v111_v18 }
  0x68   :  { %670 = vmatpush.msra.mxu0 %v2179_v16  ;;  %711 = vmatpush.msra.mxu1 %v2086_v47  ;;  %v2367_v47 = vand.u32 4294901760, %v114_v0  ;;  %v99_v16 = vld [vmem:[#allocation6 + $0x100] sm:$0xff] }
  0x69   :  { %776 = vmatpush.msra.mxu2 %v2772_v27  ;;  %831 = vmatpush.msra.mxu3 %v2101_v33  ;;  %v75_v27 = vld [vmem:[#allocation6 + $0x40] sm:$0xff] }
  0x6a   :  { %524 = vmatmul.f32.vlgmr.msrb.gmra.mxu2 %v2225_v32  ;;  %633 = vmatmul.f32.vlgmr.msrb.gmra.mxu3 %v2129_v23 }
  0x6b   :  { %673 = vmatpush.msra.mxu0 %v2194_v25  ;;  %713 = vmatpush.msra.mxu1 %v2101_v33  ;;  %v105_v33 = vld [vmem:[#allocation6 + $0x130] sm:$0xff]  ;;  %v2402_v25 = vsub.f32 %v108_v37, %v2384_v55  ;;  %v2506_v37 = vand.u32 4294901760, %v78_v13 }
  0x6c   :  { %780 = vmatpush.msra.mxu2 %v2773_v44  ;;  %833 = vmatpush.msra.mxu3 %v2116_v24  ;;  %v2394_v7 = vand.u32 4294901760, %v105_v33 }
  0x6d   :  { %676 = vmatpush.msra.mxu0 %v2209_v29  ;;  %715 = vmatpush.msra.mxu1 %v2116_v24  ;;  %v2382_v24 = vsub.f32 %v114_v0, %v2367_v47  ;;  %v96_v29 = vld [vmem:[#allocation6 + $0xe8] sm:$0xff] }
  0x6e   :  { %784 = vmatpush.msra.mxu2 %v592_v36  ;;  %835 = vmatpush.msra.mxu3 %v2139_v31  ;;  %v2404_v36 = vand.u32 4294901760, %v102_v12 }
  0x6f   :  { %679 = vmatpush.msra.mxu0 %v2231_v59  ;;  %717 = vmatpush.msra.mxu1 %v2139_v31  ;;  %v2392_v31 = vsub.f32 %v111_v18, %v2374_v50  ;;  %v2420_v59 = vand.u32 4294901760, %v96_v29 }
  0x70   :  { %788 = vmatpush.msra.mxu2 %v598_v35  ;;  %837 = vmatpush.msra.mxu3 %v2154_v60  ;;  %v2429_v1 = vsub.f32 %v102_v12, %v2404_v36  ;;  %v72_v12 = vld [vmem:[#allocation6 + $0x28] sm:$0xff] }
  0x71   :  { %682 = vmatpush.msra.mxu0 %v2247_v9  ;;  %719 = vmatpush.msra.mxu1 %v2154_v60  ;;  %v910_v60 = vand.u32 4294901760, %v2382_v24  ;;  %v916_v35 = vand.u32 4294901760, %v2392_v31  ;;  %v2434_v9 = vand.u32 4294901760, %v93_v41 }
  0x72   :  { %792 = vmatpush.msra.mxu2 %v604_v10  ;;  %839 = vmatpush.msra.mxu3 %v2166_v38  ;;  %v2415_v10 = vand.u32 4294901760, %v99_v16  ;;  %v934_v61 = vand.u32 4294901760, %v2429_v1 }
  0x73   :  { %532 = vmatmul.f32.gmra.mxu2 %v2284_v22  ;;  %637 = vmatmul.f32.gmra.mxu3 %v2186_v2 }
  0x74   :  { %685 = vmatpush.msra.mxu0 %v2258_v46  ;;  %721 = vmatpush.msra.mxu1 %v2166_v38  ;;  %v2413_v38 = vsub.f32 %v105_v33, %v2394_v7  ;;  %v2443_v26 = vsub.f32 %v99_v16, %v2415_v10  ;;  %v2449_v46 = vsub.f32 %v96_v29, %v2420_v59 }
  0x75   :  { %796 = vmatpush.msra.mxu2 %v610_v4  ;;  %841 = vmatpush.msra.mxu3 %v2184_v3  ;;  %v922_v4 = vand.u32 4294901760, %v2402_v25  ;;  %v935_v51 = vsub.f32 %v2429_v1, %v934_v61 }
  0x76   :  { %688 = vmatpush.msra.mxu0 %v2274_v21  ;;  %723 = vmatpush.msra.mxu1 %v2184_v3  ;;  %v911_v3 = vsub.f32 %v2382_v24, %v910_v60  ;;  %v928_v20 = vand.u32 4294901760, %v2413_v38  ;;  %v2462_v21 = vsub.f32 %v93_v41, %v2434_v9  ;;  %v940_v17 = vand.u32 4294901760, %v2443_v26 }
  0x77   :  { %800 = vmatpush.msra.mxu2 %v616_v52  ;;  %843 = vmatpush.msra.mxu3 %v2203_v15  ;;  %v90_v52 = vld [vmem:[#allocation6 + $0xb8] sm:$0xff]  ;;  %v923_v28 = vsub.f32 %v2402_v25, %v922_v4  ;;  %v946_v45 = vand.u32 4294901760, %v2449_v46  ;;  %v936_v0 = vand.u32 4294901760, %v935_v51  ;;  %v2516_v41 = vsub.f32 %v81_v58, %v2493_v8 }
  0x78   :  { %691 = vmatmul.f32.vlgmr.msra.gmra.mxu0 %v2152_v57  ;;  %725 = vmatpush.msra.mxu1 %v2203_v15  ;;  %v917_v15 = vsub.f32 %v2392_v31, %v916_v35  ;;  %v2457_v34 = vand.u32 4294901760, %v90_v52  ;;  %v929_v62 = vsub.f32 %v2413_v38, %v928_v20  ;;  %v952_v63 = vand.u32 4294901760, %v2462_v21 }
  0x79   :  { %804 = vmatpush.msra.mxu2 %v622_v48  ;;  %845 = vmatpush.msra.mxu3 %v2219_v14  ;;  %v912_v48 = vand.u32 4294901760, %v911_v3  ;;  %v941_v54 = vsub.f32 %v2443_v26, %v940_v17  ;;  %v947_v40 = vsub.f32 %v2449_v46, %v946_v45  ;;  %v2518_v3 = vand.u32 4294901760, %v75_v27 }
  0x7a   :  { %727 = vmatpush.msra.mxu1 %v2219_v14  ;;  %860 = vmatpush.msrb.mxu0 %v2367_v47  ;;  %v87_v14 = vld [vmem:[#allocation6 + $0xa0] sm:$0xff]  ;;  %v2480_v6 = vsub.f32 %v90_v52, %v2457_v34  ;;  %v930_v43 = vand.u32 4294901760, %v929_v62  ;;  %v953_v33 = vsub.f32 %v2462_v21, %v952_v63  ;;  %v976_v58 = vand.u32 4294901760, %v2516_v41 }
  0x7b   :  { %808 = vmatpush.msra.mxu2 %v628_v39  ;;  %847 = vmatpush.msra.mxu3 %v2233_v19  ;;  %v84_v39 = vld [vmem:[#allocation6 + $0x88] sm:$0xff]  ;;  %v2470_v53 = vand.u32 4294901760, %v87_v14  ;;  %v942_v16 = vand.u32 4294901760, %v941_v54  ;;  %v948_v52 = vand.u32 4294901760, %v947_v40 }
  0x7c   :  { %810 = vmatmul.f32.vlgmr.msra.gmra.mxu2 %v2129_v23  ;;  %729 = vmatpush.msra.mxu1 %v2233_v19  ;;  %v918_v19 = vand.u32 4294901760, %v917_v15  ;;  %v2482_v56 = vand.u32 4294901760, %v84_v39  ;;  %v958_v18 = vand.u32 4294901760, %v2480_v6  ;;  %v69_v15 = vld [vmem:[#allocation6 + $0x10] sm:$0xff] }
  0x7d   :  { %849 = vmatpush.msra.mxu3 %v2252_v11  ;;  %862 = vmatpush.msrb.mxu0 %v2374_v50  ;;  %v2491_v42 = vsub.f32 %v87_v14, %v2470_v53  ;;  %v2542_v51 = vand.u32 4294901760, %v69_v15 }
  0x7e   :  { %851 = vmatmul.f32.vlgmr.msra.gmra.mxu3 %v2129_v23  ;;  %731 = vmatpush.msra.mxu1 %v2252_v11  ;;  %v924_v11 = vand.u32 4294901760, %v923_v28  ;;  %v2504_v44 = vsub.f32 %v84_v39, %v2482_v56  ;;  %v959_v14 = vsub.f32 %v2480_v6, %v958_v18  ;;  %v2528_v28 = vsub.f32 %v78_v13, %v2506_v37 }
  0x7f   :  { %735 = vmatmul.f32.vlgmr.msra.gmra.mxu1 %v2176_v49  ;;  %864 = vmatpush.msrb.mxu0 %v2384_v55  ;;  %v964_v29 = vand.u32 4294901760, %v2491_v42  ;;  %v2530_v39 = vand.u32 4294901760, %v72_v12 }
  0x80   :  { %696 = vmatmul.f32.gmra.mxu0 %v2212_v5  ;;  %913 = vmatpush.msrb.mxu1 %v912_v48  ;;  %v970_v48 = vand.u32 4294901760, %v2504_v44  ;;  %v960_v13 = vand.u32 4294901760, %v959_v14  ;;  %v982_v54 = vand.u32 4294901760, %v2528_v28 }
  0x81   :  { %866 = vmatpush.msrb.mxu0 %v2394_v7  ;;  %1015 = vmatpush.msrb.mxu2 %v2382_v24  ;;  %v965_v62 = vsub.f32 %v2491_v42, %v964_v29  ;;  %v2552_v40 = vsub.f32 %v72_v12, %v2530_v39 }
  0x82   :  { %919 = vmatpush.msrb.mxu1 %v918_v19  ;;  %1073 = vmatpush.msrb.mxu3 %v2367_v47  ;;  %v954_v19 = vand.u32 4294901760, %v953_v33 }
  0x83   :  { %868 = vmatpush.msrb.mxu0 %v2404_v36  ;;  %1018 = vmatpush.msrb.mxu2 %v2392_v31  ;;  %v994_v14 = vand.u32 4294901760, %v2552_v40 }
  0x84   :  { %814 = vmatmul.f32.gmra.mxu2 %v2186_v2  ;;  %925 = vmatpush.msrb.mxu1 %v924_v11  ;;  %v2540_v11 = vsub.f32 %v75_v27, %v2518_v3  ;;  %v966_v27 = vand.u32 4294901760, %v965_v62 }
  0x85   :  { %870 = vmatpush.msrb.mxu0 %v2415_v10  ;;  %1021 = vmatpush.msrb.mxu2 %v2402_v25 }
  0x86   :  { %855 = vmatmul.f32.gmra.mxu3 %v2186_v2  ;;  %931 = vmatpush.msrb.mxu1 %v930_v43  ;;  %v971_v43 = vsub.f32 %v2504_v44, %v970_v48  ;;  %v988_v33 = vand.u32 4294901760, %v2540_v11 }
  0x87   :  { %741 = vmatmul.f32.gmra.mxu1 %v2240_v30  ;;  %872 = vmatpush.msrb.mxu0 %v2420_v59 }
  0x88   :  { %937 = vmatpush.msrb.mxu1 %v936_v0  ;;  %1075 = vmatpush.msrb.mxu3 %v2374_v50  ;;  %v977_v0 = vsub.f32 %v2516_v41, %v976_v58  ;;  %v972_v12 = vand.u32 4294901760, %v971_v43  ;;  %v995_v43 = vsub.f32 %v2552_v40, %v994_v14 }
  0x89   :  { %874 = vmatpush.msrb.mxu0 %v2434_v9  ;;  %1024 = vmatpush.msrb.mxu2 %v2413_v38 }
  0x8a   :  { %943 = vmatpush.msrb.mxu1 %v942_v16  ;;  %1077 = vmatpush.msrb.mxu3 %v2384_v55  ;;  %v2562_v16 = vsub.f32 %v69_v15, %v2542_v51  ;;  %v978_v15 = vand.u32 4294901760, %v977_v0 }
  0x8b   :  { %876 = vmatpush.msrb.mxu0 %v2457_v34  ;;  %1027 = vmatpush.msrb.mxu2 %v2429_v1 }
  0x8c   :  { %949 = vmatpush.msrb.mxu1 %v948_v52  ;;  %1079 = vmatpush.msrb.mxu3 %v2394_v7  ;;  %v983_v52 = vsub.f32 %v2528_v28, %v982_v54  ;;  %v1000_v62 = vand.u32 4294901760, %v2562_v16 }
  0x8d   :  { %878 = vmatpush.msrb.mxu0 %v2470_v53  ;;  %1030 = vmatpush.msrb.mxu2 %v2443_v26 }
  0x8e   :  { %955 = vmatpush.msrb.mxu1 %v954_v19  ;;  %1081 = vmatpush.msrb.mxu3 %v2404_v36  ;;  %v989_v19 = vsub.f32 %v2540_v11, %v988_v33  ;;  %v1001_v0 = vsub.f32 %v2562_v16, %v1000_v62 }
  0x8f   :  { %880 = vmatpush.msrb.mxu0 %v2482_v56  ;;  %1033 = vmatpush.msrb.mxu2 %v2449_v46 }
  0x90   :  { %961 = vmatpush.msrb.mxu1 %v960_v13  ;;  %1083 = vmatpush.msrb.mxu3 %v2415_v10  ;;  %v984_v13 = vand.u32 4294901760, %v983_v52  ;;  %v1002_v52 = vand.u32 4294901760, %v1001_v0 }
  0x91   :  { %882 = vmatpush.msrb.mxu0 %v2493_v8  ;;  %1036 = vmatpush.msrb.mxu2 %v2462_v21 }
  0x92   :  { %967 = vmatpush.msrb.mxu1 %v966_v27  ;;  %1085 = vmatpush.msrb.mxu3 %v2420_v59  ;;  %v990_v27 = vand.u32 4294901760, %v989_v19 }
  0x93   :  { %884 = vmatpush.msrb.mxu0 %v2506_v37  ;;  %1039 = vmatpush.msrb.mxu2 %v2480_v6 }
  0x94   :  { %973 = vmatpush.msrb.mxu1 %v972_v12  ;;  %1087 = vmatpush.msrb.mxu3 %v2434_v9  ;;  %v996_v12 = vand.u32 4294901760, %v995_v43 }
  0x95   :  { %886 = vmatpush.msrb.mxu0 %v2518_v3  ;;  %1042 = vmatpush.msrb.mxu2 %v2491_v42 }
  0x96   :  { %979 = vmatpush.msrb.mxu1 %v978_v15  ;;  %1089 = vmatpush.msrb.mxu3 %v2457_v34 }
  0x97   :  { %888 = vmatpush.msrb.mxu0 %v2530_v39  ;;  %1045 = vmatpush.msrb.mxu2 %v2504_v44 }
  0x98   :  { %985 = vmatpush.msrb.mxu1 %v984_v13  ;;  %1091 = vmatpush.msrb.mxu3 %v2470_v53 }
  0x99   :  { %890 = vmatpush.msrb.mxu0 %v2542_v51  ;;  %1048 = vmatpush.msrb.mxu2 %v2516_v41 }
  0x9a   :  { %991 = vmatpush.msrb.mxu1 %v990_v27  ;;  %1093 = vmatpush.msrb.mxu3 %v2482_v56 }
  0x9b   :  { %1120 = vmatpush.msra.mxu0 %v910_v60  ;;  %1051 = vmatpush.msrb.mxu2 %v2528_v28 }
  0x9c   :  { %997 = vmatpush.msrb.mxu1 %v996_v12  ;;  %1095 = vmatpush.msrb.mxu3 %v2493_v8 }
  0x9d   :  { %1124 = vmatpush.msra.mxu0 %v916_v35  ;;  %1054 = vmatpush.msrb.mxu2 %v2540_v11 }
  0x9e   :  { %896 = vmatmul.f32.vlgmr.msrb.gmra.mxu0 %v2225_v32  ;;  %1003 = vmatpush.msrb.mxu1 %v1002_v52 }
  0x9f   :  { %1128 = vmatpush.msra.mxu0 %v922_v4  ;;  %1097 = vmatpush.msrb.mxu3 %v2506_v37 }
  0xa0   :  { %1191 = vmatpush.msra.mxu1 %v2367_v47  ;;  %1057 = vmatpush.msrb.mxu2 %v2552_v40 }
  0xa1   :  { %1132 = vmatpush.msra.mxu0 %v928_v20  ;;  %1005 = vmatmul.f32.vlgmr.msrb.gmra.mxu1 %v2129_v23 }
  0xa2   :  { %1193 = vmatpush.msra.mxu1 %v2374_v50  ;;  %1099 = vmatpush.msrb.mxu3 %v2518_v3 }
  0xa3   :  { %1136 = vmatpush.msra.mxu0 %v934_v61  ;;  %1060 = vmatpush.msrb.mxu2 %v2562_v16 }
  0xa4   :  { %1195 = vmatpush.msra.mxu1 %v2384_v55  ;;  %1101 = vmatpush.msrb.mxu3 %v2530_v39 }
  0xa5   :  { %1140 = vmatpush.msra.mxu0 %v940_v17  ;;  %1063 = vmatmul.f32.vlgmr.msrb.gmra.mxu2 %v2152_v57 }
  0xa6   :  { %1197 = vmatpush.msra.mxu1 %v2394_v7  ;;  %1103 = vmatpush.msrb.mxu3 %v2542_v51 }
  0xa7   :  { %1144 = vmatpush.msra.mxu0 %v946_v45  ;;  %1107 = vmatmul.f32.vlgmr.msrb.gmra.mxu3 %v2176_v49 }
  0xa8   :  { %1199 = vmatpush.msra.mxu1 %v2404_v36  ;;  %904 = vmatmul.f32.gmra.mxu0 %v2284_v22 }
  0xa9   :  { %1148 = vmatpush.msra.mxu0 %v952_v63  ;;  %1009 = vmatmul.f32.gmra.mxu1 %v2186_v2 }
  0xaa   :  { %1201 = vmatpush.msra.mxu1 %v2415_v10 }
  0xab   :  { %1152 = vmatpush.msra.mxu0 %v958_v18 }
  0xac   :  { %1203 = vmatpush.msra.mxu1 %v2420_v59 }
  0xad   :  { %1156 = vmatpush.msra.mxu0 %v964_v29  ;;  %1068 = vmatmul.f32.gmra.mxu2 %v2212_v5 }
  0xae   :  { %1205 = vmatpush.msra.mxu1 %v2434_v9 }
  0xaf   :  { %1160 = vmatpush.msra.mxu0 %v970_v48  ;;  %1113 = vmatmul.f32.gmra.mxu3 %v2240_v30 }
  0xb0   :  { %1207 = vmatpush.msra.mxu1 %v2457_v34 }
  0xb1   :  { %1164 = vmatpush.msra.mxu0 %v976_v58 }
  0xb2   :  { %1209 = vmatpush.msra.mxu1 %v2470_v53 }
  0xb3   :  { %1168 = vmatpush.msra.mxu0 %v982_v54 }
  0xb4   :  { %1211 = vmatpush.msra.mxu1 %v2482_v56 }
  0xb5   :  { %1172 = vmatpush.msra.mxu0 %v988_v33 }
  0xb6   :  { %1213 = vmatpush.msra.mxu1 %v2493_v8 }
  0xb7   :  { %1176 = vmatpush.msra.mxu0 %v994_v14 }
  0xb8   :  { %1215 = vmatpush.msra.mxu1 %v2506_v37 }
  0xb9   :  { %1180 = vmatpush.msra.mxu0 %v1000_v62 }
  0xba   :  { %1217 = vmatpush.msra.mxu1 %v2518_v3  ;;  %1182 = vmatmul.f32.vlgmr.msra.gmra.mxu0 %v2129_v23 }
  0xbc   :  { %1219 = vmatpush.msra.mxu1 %v2530_v39 }
  0xbe   :  { %1221 = vmatpush.msra.mxu1 %v2542_v51 }
  0xbf   :  { %1223 = vmatmul.f32.vlgmr.msra.gmra.mxu1 %v2129_v23 }
  0xc0   :  { %v153_v57 = vpop.f32.mrf.mxu0 }
  0xc2   :  { %1186 = vmatmul.f32.gmra.mxu0 %v2186_v2 }
  0xc4   :  { %v262_v49 = vpop.f32.mrf.mxu1 }
  0xc5   :  { %v263_v22 = vadd.f32 %v262_v49, %v153_v57 }
  0xc7   :  { %1227 = vmatmul.f32.gmra.mxu1 %v2186_v2 }
  0xcc   :  { %v161_v5 = vpop.f32.mrf.mxu0 }
  0xcf   :  { %v266_v47 = vpop.f32.mrf.mxu1 }
  0xd0   :  { %v320_v32 = vpop.f32.mrf.mxu2  ;;  %v267_v55 = vadd.f32 %v266_v47, %v161_v5 }
  0xd1   :  { %v321_v50 = vadd.f32 %v320_v32, %v263_v22  ;;  %v1851_v32 = vmov 0.0  }
  0xd2   :  { %64 = vst [vmem:[#allocation2] sm:$0x3] %v1851_v32 }
  0xd3   :  { %v364_v30 = vpop.f32.mrf.mxu3 }
  0xd4   :  { %v365_v7 = vadd.f32 %v364_v30, %v321_v50 }
  0xd6   :  { %v439_v24 = vpop.f32.mrf.mxu0 }
  0xd7   :  { %v440_v23 = vadd.f32 %v439_v24, %v365_v7 }
  0xda   :  { %v325_v31 = vpop.f32.mrf.mxu2  ;;  %v480_v25 = vpop.f32.mrf.mxu1 }
  0xdb   :  { %v326_v36 = vadd.f32 %v325_v31, %v267_v55  ;;  %v481_v10 = vadd.f32 %v480_v25, %v440_v23 }
  0xdd   :  { %v370_v60 = vpop.f32.mrf.mxu3  ;;  %v1231_v1 = vsub.f32 0.0, %v481_v10 }
  0xde   :  { %v371_v35 = vadd.f32 %v370_v60, %v326_v36 }
  0xdf   :  { %v1235_v26 = vand.u32 2147483647, %v1231_v1  ;;  %v1233_v47 = vmax.f32 %v1231_v1, 0.0 }
  0xe0   :  { %v443_v2 = vpop.f32.mrf.mxu0 }
  0xe1   :  { %v444_v4 = vadd.f32 %v443_v2, %v371_v35  ;;  %v1237_v53 = vsub.f32 0.0, %v1235_v26 }
  0xe2   :  { %v484_v9 = vpop.f32.mrf.mxu1 }
  0xe3   :  { %v2665_v20 = vadd.f32 %v484_v9, %v444_v4  ;;  %v1239_v42 = vmul.f32 1.442695, %v1237_v53 }
  0xe5   :  { %v1232_v34 = vsub.f32 0.0, %v2665_v20  ;;  %1700 = vpow2.f32 %v1239_v42 }
  0xe7   :  { %v1236_v56 = vand.u32 2147483647, %v1232_v34  ;;  %v1234_v10 = vmax.f32 %v1232_v34, 0.0 }
  0xe9   :  { %v1238_v37 = vsub.f32 0.0, %v1236_v56 }
  0xeb   :  { %v1241_v58 = vmul.f32 1.442695, %v1238_v37  ;;  %v1701_v40 = vpop.eup %1700 }
  0xec   :  { %v1243_v62 = vadd.f32 1.0, %v1701_v40 }
  0xed   :  { %v525_v38 = vpop.f32.mrf.mxu2  ;;  %v634_v59 = vpop.f32.mrf.mxu3  ;;  %1702 = vpow2.f32 %v1241_v58 }
  0xee   :  { %v635_v21 = vadd.f32 %v634_v59, %v525_v38  ;;  %v1337_v38 = vlaneseq }
  0xf3   :  { %v1703_v27 = vpop.eup %1702 }
  0xf4   :  { %v1244_v52 = vadd.f32 1.0, %v1703_v27 }
  0xf5   :  { %v692_v46 = vpop.f32.mrf.mxu0 }
  0xf6   :  { %v533_v61 = vpop.f32.mrf.mxu2  ;;  %v638_v17 = vpop.f32.mrf.mxu3  ;;  %v693_v45 = vadd.f32 %v692_v46, %v635_v21  ;;  %v1338_v46 = vshrl.u32 %v1337_v38, 7 }
  0xf7   :  { %v639_v29 = vadd.f32 %v638_v17, %v533_v61  ;;  %v1340_v61 = vand.u32 127, %v1337_v38 }
  0xf9   :  { %vm1341_vm0 = vcmp.ge.s32.totalorder %v1338_v46, %v1340_v61 }
  0xfa   :  { %v2673_v42 = vsel %vm1341_vm0, 1.0, %v1851_v32 }
  0xfc   :  { %v736_v6 = vpop.f32.mrf.mxu1 }
  0xfd   :  { %v737_v63 = vadd.f32 %v736_v6, %v693_v45  ;;  %v697_v18 = vpop.f32.mrf.mxu0 }
  0xfe   :  { %v698_v48 = vadd.f32 %v697_v18, %v639_v29  ;;  %v1347_v29 = vsel %vm1345_vm1, %v2673_v42, 0 }
  0xff   :  { %v811_v8 = vpop.f32.mrf.mxu2 }
 0x100   :  { %v812_v44 = vadd.f32 %v811_v8, %v737_v63 }
 0x101   :  { %v852_v41 = vpop.f32.mrf.mxu3 }
 0x102   :  { %v853_v3 = vadd.f32 %v852_v41, %v812_v44 }
 0x104   :  { %v1253_v28 = vsub.f32 0.0, %v853_v3  ;;  %v742_v39 = vpop.f32.mrf.mxu1 }
 0x105   :  { %v743_v11 = vadd.f32 %v742_v39, %v698_v48 }
 0x106   :  { %v1257_v51 = vand.u32 2147483647, %v1253_v28  ;;  %v1255_v7 = vmax.f32 %v1253_v28, 0.0 }
 0x107   :  { %v815_v54 = vpop.f32.mrf.mxu2 }
 0x108   :  { %v1259_v33 = vsub.f32 0.0, %v1257_v51  ;;  %v816_v16 = vadd.f32 %v815_v54, %v743_v11  ;;  %v1297_v11 = vld [vmem:[#allocation8] sm:$0x3]  ;;  %v2678_v51 = vsub.f32 %v1347_v29, %v1347_v29 }
 0x109   :  { %v856_v14 = vpop.f32.mrf.mxu3 }
 0x10a   :  { %v1261_v15 = vmul.f32 1.442695, %v1259_v33  ;;  %v857_v19 = vadd.f32 %v856_v14, %v816_v16  ;;  %v1298_v33 = vadd.f32 1e-08, %v1297_v11  ;;  %v2681_v14 = vand.u32 4294901760, %v2678_v51 }
 0x10c   :  { %1704 = vpow2.f32 %v1261_v15  ;;  %v1254_v13 = vsub.f32 0.0, %v857_v19 }
 0x10d   :  { %1706 = vlog2.f32 %v1243_v62 }
 0x10e   :  { %v1258_v43 = vand.u32 2147483647, %v1254_v13  ;;  %v1256_v20 = vmax.f32 %v1254_v13, 0.0 }
 0x110   :  { %v1260_v0 = vsub.f32 0.0, %v1258_v43 }
 0x112   :  { %v1705_v12 = vpop.eup %1704  ;;  %v1263_v57 = vmul.f32 1.442695, %v1260_v0 }
 0x113   :  { %v1265_v49 = vadd.f32 1.0, %v1705_v12  ;;  %v1707_v5 = vpop.eup %1706  ;;  %v1369_v12 = vsub.f32 %v2678_v51, %v2681_v14 }
 0x114   :  { %1708 = vpow2.f32 %v1263_v57  ;;  %v1246_v30 = vmul.f32 0.6931472, %v1707_v5 }
 0x115   :  { %1710 = vlog2.f32 %v1265_v49 }
 0x116   :  { %1712 = vlog2.f32 %v1244_v52  ;;  %v1249_v31 = vadd.f32 %v1246_v30, %v1233_v47 }
 0x118   :  { %v1251_v23 = vsub.f32 0.0, %v1249_v31 }
 0x11a   :  { %v1709_v22 = vpop.eup %1708 }
 0x11b   :  { %v1711_v50 = vpop.eup %1710  ;;  %v1266_v24 = vadd.f32 1.0, %v1709_v22  ;;  %v897_v59 = vpop.f32.mrf.mxu0  ;;  %v2686_v22 = vand.u32 4294901760, %v1369_v12 }
 0x11c   :  { %v1713_v55 = vpop.eup %1712  ;;  %v1268_v60 = vmul.f32 0.6931472, %v1711_v50 }
 0x11d   :  { %1714 = vlog2.f32 %v1266_v24  ;;  %v1248_v36 = vmul.f32 0.6931472, %v1713_v55 }
 0x11e   :  { %v1271_v25 = vadd.f32 %v1268_v60, %v1255_v7  ;;  %v1006_v53 = vpop.f32.mrf.mxu1 }
 0x11f   :  { %v1250_v9 = vadd.f32 %v1248_v36, %v1234_v10  ;;  %v1007_v18 = vadd.f32 %v1006_v53, %v897_v59 }
 0x120   :  { %v1273_v35 = vsub.f32 0.0, %v1271_v25 }
 0x121   :  { %v1252_v45 = vsub.f32 0.0, %v1250_v9 }
 0x122   :  { %v2668_v2 = vsub.f32 %v1273_v35, %v1251_v23 }
 0x123   :  { %v1715_v4 = vpop.eup %1714 }
 0x124   :  { %v1279_v1 = vand.u32 2147483647, %v2668_v2  ;;  %v1270_v26 = vmul.f32 0.6931472, %v1715_v4  ;;  %v1277_v52 = vmax.f32 %v2668_v2, 0.0 }
 0x125   :  { %v905_v44 = vpop.f32.mrf.mxu0 }
 0x126   :  { %v1281_v21 = vsub.f32 0.0, %v1279_v1  ;;  %v1272_v17 = vadd.f32 %v1270_v26, %v1256_v20  ;;  %v1010_v58 = vpop.f32.mrf.mxu1 }
 0x127   :  { %v1011_v54 = vadd.f32 %v1010_v58, %v905_v44 }
 0x128   :  { %v1283_v6 = vmul.f32 1.442695, %v1281_v21  ;;  %v1274_v56 = vsub.f32 0.0, %v1272_v17  ;;  %v1064_v63 = vpop.f32.mrf.mxu2 }
 0x129   :  { %v1065_v28 = vadd.f32 %v1064_v63, %v1007_v18 }
 0x12a   :  { %1716 = vpow2.f32 %v1283_v6  ;;  %v2671_v34 = vsub.f32 %v1274_v56, %v1252_v45  ;;  %v1108_v41 = vpop.f32.mrf.mxu3 }
 0x12b   :  { %v1109_v40 = vadd.f32 %v1108_v41, %v1065_v28 }
 0x12c   :  { %v1280_v8 = vand.u32 2147483647, %v2671_v34  ;;  %v1278_v23 = vmax.f32 %v2671_v34, 0.0 }
 0x12e   :  { %v1282_v37 = vsub.f32 0.0, %v1280_v8 }
 0x130   :  { %v1717_v3 = vpop.eup %1716  ;;  %v1285_v48 = vmul.f32 1.442695, %v1282_v37  ;;  %v1069_v16 = vpop.f32.mrf.mxu2 }
 0x131   :  { %v1287_v39 = vadd.f32 1.0, %v1717_v3  ;;  %v1070_v13 = vadd.f32 %v1069_v16, %v1011_v54 }
 0x132   :  { %1718 = vpow2.f32 %v1285_v48  ;;  %v1114_v0 = vpop.f32.mrf.mxu3 }
 0x133   :  { %1720 = vlog2.f32 %v1287_v39  ;;  %v1115_v30 = vadd.f32 %v1114_v0, %v1070_v13 }
 0x134   :  { %1722 = vlog2.f32 %v1298_v33 }
 0x137   :  { %v1183_v15 = vpop.f32.mrf.mxu0 }
 0x138   :  { %v1719_v19 = vpop.eup %1718  ;;  %v1184_v62 = vadd.f32 %v1183_v15, %v1109_v40 }
 0x139   :  { %v1721_v43 = vpop.eup %1720  ;;  %v1288_v27 = vadd.f32 1.0, %v1719_v19 }
 0x13a   :  { %v1290_v57 = vmul.f32 0.6931472, %v1721_v43  ;;  %v1723_v47 = vpop.eup %1722 }
 0x13b   :  { %1724 = vlog2.f32 %v1288_v27  ;;  %v1300_v36 = vmul.f32 0.6931472, %v1723_v47  ;;  %v1344_v47 = vld [vmem:[#allocation2] sm:$0x3] }
 0x13c   :  { %v1224_v49 = vpop.f32.mrf.mxu1  ;;  %v1293_v5 = vadd.f32 %v1290_v57, %v1277_v52 }
 0x13d   :  { %v1225_v32 = vadd.f32 %v1224_v49, %v1184_v62  ;;  %v1303_v9 = vperm.slane %v1300_v36, 0  ;;  %v1302_v45 = vrot.slane %v1300_v36, 1 }
 0x13e   :  { %v1295_v50 = vsub.f32 %v1293_v5, %v2668_v2  ;;  %v1364_v55 = vand.u32 4294901760, %v1293_v5 }
 0x13f   :  { %v1309_v24 = vadd.f32 1e-08, %v1225_v32  ;;  %v1187_v31 = vpop.f32.mrf.mxu0  ;;  %v1307_v17 = vadd.f32 %v1303_v9, %v1293_v5  ;;  %v1304_v18 = vperm.slane %v1302_v45, 0 }
 0x140   :  { %1365 = vmatpush.msra.mxu2 %v1364_v55  ;;  %v1188_v7 = vadd.f32 %v1187_v31, %v1115_v30  ;;  %v1391_v60 = vsub.f32 %v1293_v5, %v1364_v55  ;;  %v1496_v31 = vperm.slane %v1344_v47, 0 }
 0x141   :  { %1726 = vlog2.f32 %v1309_v24  ;;  %v1725_v25 = vpop.eup %1724  ;;  %1371 = vmatmul.f32.vlgmr.msra.gmra.mxu2 %v2686_v22 }
 0x142   :  { %v1292_v35 = vmul.f32 0.6931472, %v1725_v25  ;;  %1418 = vmatpush.msrb.mxu2 %v1391_v60  ;;  %v1392_v38 = vand.u32 4294901760, %v1391_v60 }
 0x144   :  { %v1228_v10 = vpop.f32.mrf.mxu1  ;;  %v1294_v59 = vadd.f32 %v1292_v35, %v1278_v23  ;;  %1467 = vmatpush.msra.mxu2 %v1392_v38  ;;  %v1393_v2 = vsub.f32 %v1391_v60, %v1392_v38 }
 0x145   :  { %v1229_v4 = vadd.f32 %v1228_v10, %v1188_v7 }
 0x146   :  { %v1296_v1 = vsub.f32 %v1294_v59, %v2671_v34  ;;  %v1394_v46 = vand.u32 4294901760, %v1393_v2  ;;  %v1521_v21 = vand.u32 4294901760, %v1294_v59  ;;  %v1308_v28 = vadd.f32 %v1304_v18, %v1294_v59 }
 0x147   :  { %v1727_v20 = vpop.eup %1726  ;;  %v1310_v26 = vadd.f32 1e-08, %v1229_v4 }
 0x148   :  { %v1312_v61 = vmul.f32 0.6931472, %v1727_v20  ;;  %1395 = vmatpush.msra.mxu3 %v1394_v46  ;;  %1598 = vmatpush.msrb.mxu1 %v1521_v21  ;;  %v1548_v6 = vsub.f32 %v1294_v59, %v1521_v21 }
 0x149   :  { %1728 = vlog2.f32 %v1310_v26  ;;  %1685 = vmatmul.msk.f32.vlgmr.msra.gmra.mxu3 %vm1345_vm1, %v2673_v42  ;;  %1421 = vmatmul.f32.vlgmr.msrb.gmra.mxu2 %v2678_v51 }
 0x14a   :  { %v1315_v53 = vadd.f32 %v1312_v61, %v1295_v50  ;;  %1441 = vmatpush.msrb.mxu3 %v1364_v55  ;;  %1522 = vmatpush.msrb.mxu2 %v1521_v21  ;;  %v1549_v34 = vand.u32 4294901760, %v1548_v6  ;;  %v1653_v61 = vperm.slane %v1344_v47, 1 }
 0x14b   :  { %1575 = vmatpush.msrb.mxu0 %v1548_v6  ;;  %1602 = vmatmul.f32.vlgmr.msrb.gmra.mxu1 %v2681_v14 }
 0x14c   :  { %v1319_v56 = vsub.f32 %v1307_v17, %v1315_v53  ;;  %1489 = vmatpush.msra.mxu3 %v1364_v55  ;;  %v1317_v63 = vmax.f32 %v1307_v17, %v1315_v53  ;;  %v1550_v44 = vsub.f32 %v1548_v6, %v1549_v34  ;;  %1578 = vmatmul.f32.vlgmr.msrb.gmra.mxu0 %v2678_v51 }
 0x14e   :  { %v1321_v8 = vand.u32 2147483647, %v1319_v56  ;;  %v1551_v3 = vand.u32 4294901760, %v1550_v44 }
 0x14f   :  { %v1729_v37 = vpop.eup %1728 }
 0x150   :  { %v1323_v29 = vsub.f32 0.0, %v1321_v8  ;;  %v1314_v41 = vmul.f32 0.6931472, %v1729_v37 }
 0x151   :  { %1445 = vmatmul.f32.vlgmr.msrb.gmra.mxu3 %v2681_v14  ;;  %1686 = vmatmul.msk.f32.vlgmr.msra.gmra.mxu2 %vm1345_vm1, %v2673_v42 }
 0x152   :  { %v1325_v48 = vmul.f32 1.442695, %v1323_v29  ;;  %v1316_v39 = vadd.f32 %v1314_v41, %v1296_v1  ;;  %1552 = vmatpush.msrb.mxu3 %v1551_v3  ;;  %1624 = vmatpush.msra.mxu2 %v1549_v34 }
 0x154   :  { %1730 = vpow2.f32 %v1325_v48  ;;  %v1320_v58 = vsub.f32 %v1308_v28, %v1316_v39  ;;  %v1318_v11 = vmax.f32 %v1308_v28, %v1316_v39 }
 0x156   :  { %v1322_v54 = vand.u32 2147483647, %v1320_v58 }
 0x158   :  { %v1324_v40 = vsub.f32 0.0, %v1322_v54 }
 0x159   :  { %1687 = vmatmul.msk.f32.vlgmr.msra.gmra.mxu3 %vm1345_vm1, %v2673_v42  ;;  %1528 = vmatmul.f32.vlgmr.msrb.gmra.mxu2 %v2686_v22 }
 0x15a   :  { %v1731_v51 = vpop.eup %1730  ;;  %v1327_v33 = vmul.f32 1.442695, %v1324_v40  ;;  %1646 = vmatpush.msra.mxu3 %v1521_v21 }
 0x15b   :  { %v1329_v16 = vadd.f32 1.0, %v1731_v51 }
 0x15c   :  { %1732 = vpow2.f32 %v1327_v33 }
 0x15d   :  { %1734 = vlog2.f32 %v1329_v16 }
 0x161   :  { %1688 = vmatmul.msk.f32.vlgmr.msrb.gmra.mxu3 %vm1345_vm1, %v2673_v42  ;;  %1689 = vmatmul.msk.f32.vlgmr.msra.gmra.mxu2 %vm1345_vm1, %v2673_v42 }
 0x162   :  { %v1733_v14 = vpop.eup %1732 }
 0x163   :  { %v1735_v15 = vpop.eup %1734  ;;  %v1330_v19 = vadd.f32 1.0, %v1733_v14 }
 0x164   :  { %v1332_v62 = vmul.f32 0.6931472, %v1735_v15 }
 0x165   :  { %1736 = vlog2.f32 %v1330_v19 }
 0x166   :  { %v1335_v13 = vadd.f32 %v1332_v62, %v1317_v63 }
 0x169   :  { %1690 = vmatmul.msk.f32.vlgmr.msra.gmra.mxu3 %vm1345_vm1, %v2673_v42 }
 0x16b   :  { %v1737_v43 = vpop.eup %1736 }
 0x16c   :  { %v1334_v27 = vmul.f32 0.6931472, %v1737_v43 }
 0x16e   :  { %v1336_v0 = vadd.f32 %v1334_v27, %v1318_v11 }
 0x1c4   :  { %v1372_v12 = vpop.f32.mrf.mxu2 }
 0x1c8   :  { %v1603_v59 = vpop.f32.mrf.mxu1 }
 0x1c9   :  { %v1579_v38 = vpop.f32.mrf.mxu0 }
 0x1cc   :  { %v1398_v52 = vpop.f32.mrf.mxu3  ;;  %v1422_v57 = vpop.f32.mrf.mxu2 }
 0x1cd   :  { %v1399_v49 = vadd.f32 %v1398_v52, %v1372_v12 }
 0x1cf   :  { %v1423_v32 = vadd.f32 %v1422_v57, %v1399_v49 }
 0x1d4   :  { %v1446_v5 = vpop.f32.mrf.mxu3  ;;  %v1470_v30 = vpop.f32.mrf.mxu2 }
 0x1d5   :  { %v1447_v22 = vadd.f32 %v1446_v5, %v1423_v32 }
 0x1d7   :  { %v1471_v50 = vadd.f32 %v1470_v30, %v1447_v22 }
 0x1dc   :  { %v1492_v24 = vpop.f32.mrf.mxu3  ;;  %v1529_v7 = vpop.f32.mrf.mxu2 }
 0x1dd   :  { %v1493_v55 = vadd.f32 %v1492_v24, %v1471_v50 }
 0x1df   :  { %v1495_v60 = vadd.f32 %v1493_v55, %v1335_v13  ;;  %v1502_v25 = vrot.slane %v1493_v55, 7 }
 0x1e1   :  { %v1497_v42 = vadd.f32 %v1496_v31, %v1495_v60  ;;  %v1504_v36 = vadd.f32 %v1502_v25, %v1344_v47 }
 0x1e3   :  { %v1498_v23 = vmul.f32 1.442695, %v1497_v42  ;;  %1505 = vst [vmem:[#allocation2] sm:$0x1] %v1504_v36 }
 0x1e4   :  { %v1555_v35 = vpop.f32.mrf.mxu3  ;;  %v1627_v2 = vpop.f32.mrf.mxu2 }
 0x1e5   :  { %1738 = vpow2.f32 %v1498_v23  ;;  %v1556_v10 = vadd.f32 %v1555_v35, %v1529_v7 }
 0x1e7   :  { %v1580_v4 = vadd.f32 %v1579_v38, %v1556_v10 }
 0x1e9   :  { %v1604_v9 = vadd.f32 %v1603_v59, %v1580_v4 }
 0x1eb   :  { %v1739_v20 = vpop.eup %1738  ;;  %v1628_v1 = vadd.f32 %v1627_v2, %v1604_v9 }
 0x1ec   :  { %1500 = vst [vmem:[#allocation9] sm:$0xff] %v1739_v20  ;;  %v1649_v26 = vpop.f32.mrf.mxu3 }
 0x1ed   :  { %v1650_v46 = vadd.f32 %v1649_v26, %v1628_v1 }
 0x1ef   :  { %v1652_v21 = vadd.f32 %v1650_v46, %v1336_v0  ;;  %v1660_v17 = vrot.slane %v1650_v46, 6 }
 0x1f1   :  { %v1654_v53 = vadd.f32 %v1653_v61, %v1652_v21  ;;  %v1662_v45 = vadd.f32 %v1660_v17, %v1344_v47 }
 0x1f3   :  { %v1655_v6 = vmul.f32 1.442695, %v1654_v53  ;;  %1663 = vst [vmem:[#allocation2] sm:$0x2] %v1662_v45 }
 0x1f5   :  { %1740 = vpow2.f32 %v1655_v6 }
 0x1fb   :  { %v1741_v56 = vpop.eup %1740 }
 0x1fc   :  { %1658 = vst [vmem:[#allocation9 + $0x8] sm:$0xff] %v1741_v56 }
 0x1fd   :  { %1676 = dma.vmem_to_hbm [thread:$0]  %s1669_s29, 256, %s1671_s5, [#allocation5], %s1848_s24, %s1848_s24, %s1849_s25  }
 0x1fe   :  { %1842 = dma.done.wait [#allocation5], 256  }
 0x1ff   :  { %1843 = vsyncadd [#allocation5], 4294967040 }
 0x200   :  { %1681 = vsyncpa [#allocation4], 1 }
 0x201   :  { %1682 = vsyncpa [#allocation7], 1 }
 0x202   :  { %1683 = vsyncpa [#allocation5], 1 }

</bundles_post_ra>
